<compile_context>
chip_gen: v7x
topology: tpu7x:2x2x1
jax: 0.10.0
libtpu: 0.0.40
codegen_flags: <defaults>
</compile_context>

<pallas_src>
import functools
import math

import jax
import jax.numpy as jnp
from jax.experimental import pallas as pl
from jax.experimental.pallas import tpu as pltpu


# ----------------------------- kernel ------------------------------------- #

def ui_kernel(v0_ref, a1_ref, dis1_ref, w1t_ref, b1_ref,
              a2_ref, dis2_ref, w2t_ref, b2_ref, out_ref):
    # v0_ref : (rows, din) bf16, rows = block_scenes * w_pad
    # a*_ref : (rows, rows) bf16 block-diagonal thresholded adjacency
    # dis*   : (rows, 1)   f32  D^{-1/2} per node (tiled per scene)
    dis1 = dis1_ref[...]
    dis2 = dis2_ref[...]

    # ---- layer 1: dim 128 -> 256 ----
    v1 = jnp.dot(v0_ref[...], w1t_ref[...],
                 preferred_element_type=jnp.float32) + b1_ref[...]
    # A_norm @ X == dis * (A_t @ (dis * X)); block-diag A keeps scenes isolated.
    v1 = dis1 * jnp.dot(a1_ref[...], (dis1 * v1).astype(jnp.bfloat16),
                        preferred_element_type=jnp.float32)

    # ---- layer 2: dim 256 -> 256 ----
    v2 = jnp.dot(v1.astype(jnp.bfloat16), w2t_ref[...],
                 preferred_element_type=jnp.float32) + b2_ref[...]
    v2 = dis2 * jnp.dot(a2_ref[...], (dis2 * v2).astype(jnp.bfloat16),
                        preferred_element_type=jnp.float32)

    # ---- relu + log_softmax over the feature axis (PyTorch dim=1 per scene) --
    x = jnp.maximum(v2, 0.0)
    m = jnp.max(x, axis=1, keepdims=True)
    lse = m + jnp.log(jnp.sum(jnp.exp(x - m), axis=1, keepdims=True))
    out_ref[...] = x - lse


# ----------------------------- preprocessing ------------------------------- #

def _round_up(x, m):
    return (x + m - 1) // m * m


def preprocess_params(params, block_scenes=4):
    """Run once per parameter set; reuse the result for every forward call.

    Thresholds A, computes D^{-1/2}, zero-pads the node axis to a multiple of
    8 and replicates A block-diagonally for `block_scenes` scenes per chunk.
    """
    a1, w1t, b1, a2, w2t, b2 = params
    w = a1.shape[0]
    w_pad = _round_up(w, 8)

    def prep(a):
        a_t = (a >= 0.5).astype(jnp.float32)
        d = jnp.maximum(jnp.sum(a_t, axis=1, keepdims=True), 1.0)  # NaN guard
        dis = jax.lax.rsqrt(d)
        a_t = jnp.pad(a_t, ((0, w_pad - w), (0, w_pad - w)))       # zeros isolate pad
        dis = jnp.pad(dis, ((0, w_pad - w), (0, 0)), constant_values=1.0)
        a_blk = jnp.kron(jnp.eye(block_scenes, dtype=jnp.float32), a_t)
        dis_blk = jnp.tile(dis, (block_scenes, 1))
        return a_blk.astype(jnp.bfloat16), dis_blk.astype(jnp.float32)

    a1_blk, dis1_blk = prep(a1)
    a2_blk, dis2_blk = prep(a2)
    return (a1_blk, dis1_blk, w1t.astype(jnp.bfloat16), b1.astype(jnp.float32),
            a2_blk, dis2_blk, w2t.astype(jnp.bfloat16), b2.astype(jnp.float32))


# ----------------------------- wrapper ------------------------------------- #

def _shared(shape):
    # Whole-array block, identical for every grid step (stays VMEM-resident).
    n = len(shape)
    return pl.BlockSpec(shape, lambda i, n=n: (0,) * n)


@functools.partial(jax.jit, static_argnames=("block_scenes",))
def unlimited_interaction(actor, lane, prepped, block_scenes=4):
    """actor: (B, n_actor_rows, 128), lane: (B, n_lane_rows, 128)
       -> (B, w_size, 256) f32 log-probabilities."""
    a1_blk, dis1_blk, w1t, b1, a2_blk, dis2_blk, w2t, b2 = prepped
    bt = block_scenes
    batch = actor.shape[0]
    w = actor.shape[1] + lane.shape[1]
    din = actor.shape[2]
    dout = w2t.shape[1]
    rows = a1_blk.shape[0]                 # bt * w_pad
    w_pad = rows // bt
    assert w_pad >= w and rows == bt * w_pad
    b_pad = _round_up(batch, bt)

    v0 = jnp.concatenate([actor, lane], axis=1)                   # (B, w, din)
    v0 = jnp.pad(v0, ((0, b_pad - batch), (0, w_pad - w), (0, 0)))
    v0 = v0.reshape(b_pad * w_pad, din).astype(jnp.bfloat16)      # flat node rows

    out_flat = pl.pallas_call(
        ui_kernel,
        out_shape=jax.ShapeDtypeStruct((b_pad * w_pad, dout), jnp.float32),
        grid=(b_pad // bt,),
        in_specs=[
            pl.BlockSpec((rows, din), lambda i: (i, 0)),
            _shared(a1_blk.shape), _shared(dis1_blk.shape),
            _shared(w1t.shape), _shared(b1.shape),
            _shared(a2_blk.shape), _shared(dis2_blk.shape),
            _shared(w2t.shape), _shared(b2.shape),
        ],
        out_specs=pl.BlockSpec((rows, dout), lambda i: (i, 0)),
        compiler_params=pltpu.CompilerParams(
            dimension_semantics=("parallel",)),   # chunks shard across TCs
    )(v0, a1_blk, dis1_blk, w1t, b1, a2_blk, dis2_blk, w2t, b2)

    out = out_flat.reshape(b_pad, w_pad, dout)[:batch, :w]
    return out


# ----------------------------- reference ----------------------------------- #

def _normalize_ref(a):
    a_t = (a >= 0.5).astype(jnp.float32)
    d = jnp.maximum(jnp.sum(a_t, axis=1, keepdims=True), 1.0)   # same guard
    dis = jax.lax.rsqrt(d)
    return dis * a_t * jnp.transpose(dis)


def _reference(actor, lane, params):
    """Pure-JAX f32 reference for the intended semantics (batched)."""
    a1, w1t, b1, a2, w2t, b2 = params
    v = jnp.concatenate([actor, lane], axis=1)                  # (B, w, din)
    for a, wt, b in ((a1, w1t, b1), (a2, w2t, b2)):
        v = jnp.matmul(_normalize_ref(a), v @ wt + b)
    x = jnp.maximum(v, 0.0)
    return jax.nn.log_softmax(x, axis=-1)


def make_params(key, w_size, dims=(128, 256, 256)):
    """Deterministic init (PyTorch-like uniform(-1/sqrt(fan_in), +1/sqrt(fan_in)))."""
    d0, d1, d2 = dims
    keys = jax.random.split(key, 6)
    a1 = jax.random.normal(keys[0], (w_size, w_size), jnp.float32)
    a2 = jax.random.normal(keys[1], (w_size, w_size), jnp.float32)
    b = 1.0 / math.sqrt(d0)
    w1t = jax.random.uniform(keys[2], (d0, d1), jnp.float32, -b, b)   # W1^T
    b1 = jax.random.uniform(keys[3], (1, d1), jnp.float32, -b, b)
    b = 1.0 / math.sqrt(d1)
    w2t = jax.random.uniform(keys[4], (d1, d2), jnp.float32, -b, b)   # W2^T
    b2 = jax.random.uniform(keys[5], (1, d2), jnp.float32, -b, b)
    return (a1, w1t, b1, a2, w2t, b2)


# ----------------------------- demo ---------------------------------------- #

if __name__ == "__main__":
    actor_size, lane_size, t_size = 8, 12, 20
    dim_in = 128
    w_size = actor_size + t_size + lane_size          # 40
    batch = 8                                         # scenes per call
    block_scenes = 4                                  # scenes per grid step

    key = jax.random.PRNGKey(0)
    k_actor, k_lane, k_params = jax.random.split(key, 3)
    # actor carries actor_size + t_size rows, lane carries lane_size rows, so
    # cat(actor, lane) along the node axis has w_size rows per scene.
    actor = jax.random.normal(
        k_actor, (batch, actor_size + t_size, dim_in), jnp.float32)
    lane = jax.random.normal(k_lane, (batch, lane_size, dim_in), jnp.float32)

    params = make_params(k_params, w_size)
    prepped = preprocess_params(params, block_scenes=block_scenes)  # hoisted

    out = unlimited_interaction(actor, lane, prepped, block_scenes=block_scenes)
    out = jax.block_until_ready(out)

    ref = _reference(actor, lane, params)
    assert out.shape == (batch, w_size, 256)
    # bf16 MXU inputs with f32 accumulation -> relaxed tolerance vs pure-f32 ref.
    assert jnp.allclose(out, ref, atol=1e-1, rtol=1e-2), (
        "mismatch vs JAX reference: max abs err = "
        f"{float(jnp.max(jnp.abs(out - ref)))}")
    print("KERNEL_OK")
</pallas_src>

<mosaic_0001>
module attributes {stable_mosaic.version = 11 : i64} {
  func.func @ui_kernel(%arg0: i32, %arg1: memref<160x128xbf16, #tpu.memory_space<vmem>>, %arg2: memref<160x160xbf16, #tpu.memory_space<vmem>>, %arg3: memref<160x1xf32, #tpu.memory_space<vmem>>, %arg4: memref<128x256xbf16, #tpu.memory_space<vmem>>, %arg5: memref<1x256xf32, #tpu.memory_space<vmem>>, %arg6: memref<160x160xbf16, #tpu.memory_space<vmem>>, %arg7: memref<160x1xf32, #tpu.memory_space<vmem>>, %arg8: memref<256x256xbf16, #tpu.memory_space<vmem>>, %arg9: memref<1x256xf32, #tpu.memory_space<vmem>>, %arg10: memref<160x256xf32, #tpu.memory_space<vmem>>) attributes {dimension_semantics = [#tpu.dimension_semantics<parallel>], iteration_bounds = array<i64: 2>, scalar_prefetch = 0 : i64, scratch_operands = 0 : i64, tpu.core_type = #tpu.core_type<tc>, window_params = [{transform_indices = @transform_0, window_bounds = array<i64: 160, 128>}, {pipeline_mode = #tpu.pipeline_mode<synchronous>, transform_indices = @transform_1, window_bounds = array<i64: 160, 160>}, {pipeline_mode = #tpu.pipeline_mode<synchronous>, transform_indices = @transform_2, window_bounds = array<i64: 160, 1>}, {pipeline_mode = #tpu.pipeline_mode<synchronous>, transform_indices = @transform_3, window_bounds = array<i64: 128, 256>}, {pipeline_mode = #tpu.pipeline_mode<synchronous>, transform_indices = @transform_4, window_bounds = array<i64: 1, 256>}, {pipeline_mode = #tpu.pipeline_mode<synchronous>, transform_indices = @transform_5, window_bounds = array<i64: 160, 160>}, {pipeline_mode = #tpu.pipeline_mode<synchronous>, transform_indices = @transform_6, window_bounds = array<i64: 160, 1>}, {pipeline_mode = #tpu.pipeline_mode<synchronous>, transform_indices = @transform_7, window_bounds = array<i64: 256, 256>}, {pipeline_mode = #tpu.pipeline_mode<synchronous>, transform_indices = @transform_8, window_bounds = array<i64: 1, 256>}, {transform_indices = @transform_9, window_bounds = array<i64: 160, 256>}]} {
    %c0 = arith.constant 0 : index
    %c0_0 = arith.constant 0 : index
    %0 = vector.load %arg3[%c0, %c0_0] : memref<160x1xf32, #tpu.memory_space<vmem>>, vector<160x1xf32>
    %c0_1 = arith.constant 0 : index
    %c0_2 = arith.constant 0 : index
    %1 = vector.load %arg7[%c0_1, %c0_2] : memref<160x1xf32, #tpu.memory_space<vmem>>, vector<160x1xf32>
    %c0_3 = arith.constant 0 : index
    %c0_4 = arith.constant 0 : index
    %2 = vector.load %arg1[%c0_3, %c0_4] : memref<160x128xbf16, #tpu.memory_space<vmem>>, vector<160x128xbf16>
    %c0_5 = arith.constant 0 : index
    %c0_6 = arith.constant 0 : index
    %3 = vector.load %arg4[%c0_5, %c0_6] : memref<128x256xbf16, #tpu.memory_space<vmem>>, vector<128x256xbf16>
    %cst = arith.constant dense<0.000000e+00> : vector<160x256xf32>
    %4 = tpu.matmul %2, %3, %cst {dimension_numbers = #tpu.dot_dimension_numbers<[1], [0], [0], [1], [0, 0, 1, 1], [], []>} : vector<160x128xbf16>, vector<128x256xbf16>, vector<160x256xf32> -> vector<160x256xf32>
    %c0_7 = arith.constant 0 : index
    %c0_8 = arith.constant 0 : index
    %5 = vector.load %arg5[%c0_7, %c0_8] : memref<1x256xf32, #tpu.memory_space<vmem>>, vector<1x256xf32>
    %6 = vector.broadcast %5 : vector<1x256xf32> to vector<160x256xf32>
    %7 = arith.addf %4, %6 : vector<160x256xf32>
    %c0_9 = arith.constant 0 : index
    %c0_10 = arith.constant 0 : index
    %8 = vector.load %arg2[%c0_9, %c0_10] : memref<160x160xbf16, #tpu.memory_space<vmem>>, vector<160x160xbf16>
    %9 = vector.broadcast %0 : vector<160x1xf32> to vector<160x256xf32>
    %10 = arith.mulf %9, %7 : vector<160x256xf32>
    %11 = arith.truncf %10 : vector<160x256xf32> to vector<160x256xbf16>
    %cst_11 = arith.constant dense<0.000000e+00> : vector<160x256xf32>
    %12 = tpu.matmul %8, %11, %cst_11 {dimension_numbers = #tpu.dot_dimension_numbers<[1], [0], [0], [1], [0, 0, 1, 1], [], []>} : vector<160x160xbf16>, vector<160x256xbf16>, vector<160x256xf32> -> vector<160x256xf32>
    %13 = vector.broadcast %0 : vector<160x1xf32> to vector<160x256xf32>
    %14 = arith.mulf %13, %12 : vector<160x256xf32>
    %15 = arith.truncf %14 : vector<160x256xf32> to vector<160x256xbf16>
    %c0_12 = arith.constant 0 : index
    %c0_13 = arith.constant 0 : index
    %16 = vector.load %arg8[%c0_12, %c0_13] : memref<256x256xbf16, #tpu.memory_space<vmem>>, vector<256x256xbf16>
    %cst_14 = arith.constant dense<0.000000e+00> : vector<160x256xf32>
    %17 = tpu.matmul %15, %16, %cst_14 {dimension_numbers = #tpu.dot_dimension_numbers<[1], [0], [0], [1], [0, 0, 1, 1], [], []>} : vector<160x256xbf16>, vector<256x256xbf16>, vector<160x256xf32> -> vector<160x256xf32>
    %c0_15 = arith.constant 0 : index
    %c0_16 = arith.constant 0 : index
    %18 = vector.load %arg9[%c0_15, %c0_16] : memref<1x256xf32, #tpu.memory_space<vmem>>, vector<1x256xf32>
    %19 = vector.broadcast %18 : vector<1x256xf32> to vector<160x256xf32>
    %20 = arith.addf %17, %19 : vector<160x256xf32>
    %c0_17 = arith.constant 0 : index
    %c0_18 = arith.constant 0 : index
    %21 = vector.load %arg6[%c0_17, %c0_18] : memref<160x160xbf16, #tpu.memory_space<vmem>>, vector<160x160xbf16>
    %22 = vector.broadcast %1 : vector<160x1xf32> to vector<160x256xf32>
    %23 = arith.mulf %22, %20 : vector<160x256xf32>
    %24 = arith.truncf %23 : vector<160x256xf32> to vector<160x256xbf16>
    %cst_19 = arith.constant dense<0.000000e+00> : vector<160x256xf32>
    %25 = tpu.matmul %21, %24, %cst_19 {dimension_numbers = #tpu.dot_dimension_numbers<[1], [0], [0], [1], [0, 0, 1, 1], [], []>} : vector<160x160xbf16>, vector<160x256xbf16>, vector<160x256xf32> -> vector<160x256xf32>
    %26 = vector.broadcast %1 : vector<160x1xf32> to vector<160x256xf32>
    %27 = arith.mulf %26, %25 : vector<160x256xf32>
    %cst_20 = arith.constant 0.000000e+00 : f32
    %28 = vector.broadcast %cst_20 : f32 to vector<160x256xf32>
    %29 = arith.maximumf %27, %28 : vector<160x256xf32>
    %cst_21 = arith.constant dense<0xFF800000> : vector<160xf32>
    %30 = vector.multi_reduction <maximumf>, %29, %cst_21 [1] : vector<160x256xf32> to vector<160xf32>
    %31 = vector.shape_cast %30 : vector<160xf32> to vector<160x1xf32>
    %32 = vector.broadcast %31 : vector<160x1xf32> to vector<160x256xf32>
    %33 = arith.subf %29, %32 : vector<160x256xf32>
    %34 = math.exp %33 : vector<160x256xf32>
    %cst_22 = arith.constant dense<0.000000e+00> : vector<160xf32>
    %35 = vector.multi_reduction <add>, %34, %cst_22 [1] : vector<160x256xf32> to vector<160xf32>
    %36 = vector.shape_cast %35 : vector<160xf32> to vector<160x1xf32>
    %37 = math.log %36 : vector<160x1xf32>
    %38 = arith.addf %31, %37 : vector<160x1xf32>
    %39 = vector.broadcast %38 : vector<160x1xf32> to vector<160x256xf32>
    %40 = arith.subf %29, %39 : vector<160x256xf32>
    %c0_23 = arith.constant 0 : index
    %c0_24 = arith.constant 0 : index
    %41 = vector.load %arg10[%c0_23, %c0_24] : memref<160x256xf32, #tpu.memory_space<vmem>>, vector<160x256xf32>
    tpu.vector_store %arg10[%c0_23, %c0_24], %40 {strides = array<i32>} : memref<160x256xf32, #tpu.memory_space<vmem>>, vector<160x256xf32>,
    return
  }
  func.func @transform_0(%arg0: i32) -> (i32, i32) {
    %c0_i32 = arith.constant 0 : i32
    %c0_i32_0 = arith.constant 0 : i32
    return %arg0, %c0_i32 : i32, i32
  }
  func.func @transform_1(%arg0: i32) -> (i32, i32) {
    %c0_i32 = arith.constant 0 : i32
    %c0_i32_0 = arith.constant 0 : i32
    %c0_i32_1 = arith.constant 0 : i32
    return %c0_i32, %c0_i32_0 : i32, i32
  }
  func.func @transform_2(%arg0: i32) -> (i32, i32) {
    %c0_i32 = arith.constant 0 : i32
    %c0_i32_0 = arith.constant 0 : i32
    %c0_i32_1 = arith.constant 0 : i32
    return %c0_i32, %c0_i32_0 : i32, i32
  }
  func.func @transform_3(%arg0: i32) -> (i32, i32) {
    %c0_i32 = arith.constant 0 : i32
    %c0_i32_0 = arith.constant 0 : i32
    %c0_i32_1 = arith.constant 0 : i32
    return %c0_i32, %c0_i32_0 : i32, i32
  }
  func.func @transform_4(%arg0: i32) -> (i32, i32) {
    %c0_i32 = arith.constant 0 : i32
    %c0_i32_0 = arith.constant 0 : i32
    %c0_i32_1 = arith.constant 0 : i32
    return %c0_i32, %c0_i32_0 : i32, i32
  }
  func.func @transform_5(%arg0: i32) -> (i32, i32) {
    %c0_i32 = arith.constant 0 : i32
    %c0_i32_0 = arith.constant 0 : i32
    %c0_i32_1 = arith.constant 0 : i32
    return %c0_i32, %c0_i32_0 : i32, i32
  }
  func.func @transform_6(%arg0: i32) -> (i32, i32) {
    %c0_i32 = arith.constant 0 : i32
    %c0_i32_0 = arith.constant 0 : i32
    %c0_i32_1 = arith.constant 0 : i32
    return %c0_i32, %c0_i32_0 : i32, i32
  }
  func.func @transform_7(%arg0: i32) -> (i32, i32) {
    %c0_i32 = arith.constant 0 : i32
    %c0_i32_0 = arith.constant 0 : i32
    %c0_i32_1 = arith.constant 0 : i32
    return %c0_i32, %c0_i32_0 : i32, i32
  }
  func.func @transform_8(%arg0: i32) -> (i32, i32) {
    %c0_i32 = arith.constant 0 : i32
    %c0_i32_0 = arith.constant 0 : i32
    %c0_i32_1 = arith.constant 0 : i32
    return %c0_i32, %c0_i32_0 : i32, i32
  }
  func.func @transform_9(%arg0: i32) -> (i32, i32) {
    %c0_i32 = arith.constant 0 : i32
    %c0_i32_0 = arith.constant 0 : i32
    return %arg0, %c0_i32 : i32, i32
  }
}

</mosaic_0001>

<bundles_post_ra>
// kernel: unlimited_interaction.1
= control target key start
LH: loop header
LB: loop body
LE: loop exit
PB: predicated region body
PF: predicated region fallthrough
CT: control target
= control target key end

     0   :  { %14 = vsyncpa [#allocation3], 0  ;;  %s4275_s0 = inlined_call_operand.vmem [shape: bf16[320,128], index: 0, kind: input, shape index: {}]   ;;  %s4276_s1 = inlined_call_operand.vmem [shape: bf16[160,160], index: 1, kind: input, shape index: {}]   ;;  %s4277_s2 = inlined_call_operand.vmem [shape: f32[160,1], index: 2, kind: input, shape index: {}]   ;;  %s4278_s3 = inlined_call_operand.vmem [shape: bf16[128,256], index: 3, kind: input, shape index: {}]   ;;  %s4279_s4 = inlined_call_operand.vmem [shape: f32[1,256], index: 4, kind: input, shape index: {}]   ;;  %s4280_s5 = inlined_call_operand.vmem [shape: bf16[160,160], index: 5, kind: input, shape index: {}]   ;;  %s4281_s6 = inlined_call_operand.vmem [shape: f32[160,1], index: 6, kind: input, shape index: {}]   ;;  %s4282_s7 = inlined_call_operand.vmem [shape: bf16[256,256], index: 7, kind: input, shape index: {}]   ;;  %s4283_s8 = inlined_call_operand.vmem [shape: f32[1,256], index: 8, kind: input, shape index: {}]   ;;  %s4284_s9 = inlined_call_operand.hbm [shape: f32[320,256], index: 9, kind: output, shape index: {}]  }
   0x1   :  { %16 = vsyncpa [#allocation3 + $0x1], 0  ;;  %s3052_s30 = smov 0   ;;  %s3054_s10 = smov 0  }
   0x2   :  { %s3056_s11 = smov 0   ;;  %s3058_s12 = smov 0  }
   0x3 LB: > { %s3073_s13 = sadd.s32 4294967295, %s2996_s12   ;;  %s2497_s14 = sadd.s32 4294967294, %s2996_s12   ;;  %s2996_s12 = sphi %s3058_s12, %s4329_s12   ;;  %s2992_s11 = sphi %s3056_s11, %s4328_s11   ;;  %s2988_s10 = sphi %s3054_s10, %s4327_s10   ;;  %s2984_s30 = sphi %s3052_s30, %s4326_s30  }
   0x4   : > { %s3077_s15 = sadd.s32 1, %s2996_s12   ;;  %s223_s16 = sadd.s32 1, %s2992_s11 }
   0x5   : > { %s220_s17 = ssub.s32 %s2996_s12, %s3077_s15  ;;  %p233_p0 = scmp.ne.s32.totalorder %s2992_s11, %s2988_s10 }
   0x6   : > { %p221_p1 = scmp.eq.s32.totalorder %s220_s17, 0  ;;  %p234_p2 = scmp.eq.s32.totalorder %s3073_s13, 1 }
   0x7   : > { %p239_p3 = scmp.ne.s32.totalorder %s2988_s10, %s2984_s30  ;;  %p240_p4 = scmp.eq.s32.totalorder %s2497_s14, 1 }
   0x8   : > { %s3088_s18 = scalar_select %p221_p1, %s2992_s11, %s223_s16  }
   0x9   : > { %p3090_p5 = por %p234_p2, %p233_p0  ;;  %p3094_p6 = por %p240_p4, %p239_p3 }
   0xa   : > { %p2500_p7 = scmp.ge.s32.totalorder %s2996_s12, 1  ;;  %p291_p8 = scmp.lt.s32.totalorder %s2996_s12, 3 }
   0xc   : > { %p292_p9 = pnand %p2500_p7, %p291_p8 }
   0xe   : > { %295 = sbr.rel (%p292_p9) target bundleno = 1496 (0x5d8), region = 56 }
  0x15   : > { %v2672_v0 = vld [vmem:[%s4278_s3 + $0x4] ss:$8 sps:$4 sm:$0xff]   ;;  %s327_s23 = smul.u32 20, %s3073_s13  ;;  %v2674_v1 = vld [vmem:[%s4278_s3] ss:$8 sps:$4 sm:$0xff]   ;;  %v2998_v2 = vmov 0  }
  0x16   : > { %595 = vmatprep.mubr.bf16.mxu0 %v2998_v2  ;;  %2670 = vset.pattern.permute.xlu0 %v2998_v2  ;;  %v2675_v3 = vld [vmem:[%s4278_s3 + $0x14] ss:$8 sps:$4 sm:$0xff]   ;;  %v2677_v4 = vld [vmem:[%s4278_s3 + $0x10] ss:$8 sps:$4 sm:$0xff]   ;;  %v2678_v5 = vld [vmem:[%s4278_s3 + $0x24] ss:$8 sps:$4 sm:$0xff]  }
  0x17   : > { %563 = vmatprep.subr.bf16.mxu0 %v2672_v0  ;;  %p328_p10 = scmp.lt.s32.totalorder %s327_s23, 39  ;;  %2671 = vset.pattern.permute.xlu1 %v2998_v2  ;;  %v2680_v6 = vld [vmem:[%s4278_s3 + $0x20] ss:$8 sps:$4 sm:$0xff]   ;;  %v2681_v7 = vld [vmem:[%s4278_s3 + $0x34] ss:$8 sps:$4 sm:$0xff]   ;;  %vm966_vm0 = vcmask 261120  }
  0x18   : > { %564 = vmatpush1.bf16.msra.mxu0 %v2674_v1  ;;  %v2683_v8 = vld [vmem:[%s4278_s3 + $0x30] ss:$8 sps:$4 sm:$0xff]   ;;  %v2684_v9 = vld [vmem:[%s4278_s3 + $0x44] ss:$8 sps:$4 sm:$0xff]   ;;  %v2686_v10 = vld [vmem:[%s4278_s3 + $0x40] ss:$8 sps:$4 sm:$0xff]  }
  0x19   : > { %565 = vmatprep.subr.bf16.mxu0 %v2675_v3  ;;  %s4331_s23 = smov (!%p328_p10, %s327_s23), 39  ;;  %v2687_v11 = vld [vmem:[%s4278_s3 + $0x54] ss:$8 sps:$4 sm:$0xff]   ;;  %v335_v12 = vld [vmem:[%s4277_s2] sm:$0xff]  ;;  %v336_v14 = vld [vmem:[%s4277_s2 + $0x8] sm:$0xff]  ;;  %s2626_s22 = smul.u32 5120, %s3073_s13 }
  0x1a   : > { %s2501_s17 = sshll.u32 %s4331_s23, 2  ;;  %718 = vperm.xlu0 %2670, %v335_v12   ;;  %v337_v13 = vld [vmem:[%s4277_s2 + $0x10] sm:$0xff]  ;;  %v2690_v16 = vld [vmem:[%s4278_s3 + $0x64] ss:$8 sps:$4 sm:$0xff]   ;;  %v338_v17 = vld [vmem:[%s4277_s2 + $0x18] sm:$0xff]  ;;  %s2999_s29 = smov [#allocation2]  }
  0x1b   : > { %s3128_s28 = scalar_lea.vmem %s4275_s0, %s2501_s17  ;;  %v2689_v15 = vld [vmem:[%s4278_s3 + $0x50] ss:$8 sps:$4 sm:$0xff]   ;;  %728 = vperm.xlu1 %2671, %v337_v13   ;;  %v339_v18 = vld [vmem:[%s4277_s2 + $0x20] sm:$0xff]  ;;  %v2693_v20 = vld [vmem:[%s4278_s3 + $0x74] ss:$8 sps:$4 sm:$0xff]   ;;  %s4222_s26 = scalar_lea.hbm %s4284_s9, %s2626_s22 }
  0x1c   : > { %566 = vmatpush1.bf16.msra.mxu0 %v2677_v4  ;;  %v2692_v19 = vld [vmem:[%s4278_s3 + $0x60] ss:$8 sps:$4 sm:$0xff]   ;;  %v341_v22 = vld [vmem:[%s4277_s2 + $0x30] sm:$0xff]  ;;  %v342_v24 = vld [vmem:[%s4277_s2 + $0x38] sm:$0xff]  ;;  %s2938_s14 = sshll.u32 %s2999_s29, 4  ;;  %s2939_s14 = int_to_ptr.vmem [resolvable:$false] %s2938_s14 }
  0x1d   : > { %567 = vmatprep.subr.bf16.mxu0 %v2678_v5  ;;  %v340_v21 = vld [vmem:[%s4277_s2 + $0x28] sm:$0xff]  ;;  %v2695_v23 = vld [vmem:[%s4278_s3 + $0x70] ss:$8 sps:$4 sm:$0xff]   ;;  %v2696_v25 = vld [vmem:[%s3128_s28] sm:$0xff]   ;;  %v413_v5 = vlaneseq  ;;  %s2940_s23 = scalar_lea.vmem %s2939_s14, 10240 }
  0x1e   : > { %723 = vperm.xlu0 %2670, %v336_v14   ;;  %v343_v26 = vld [vmem:[%s4277_s2 + $0x40] sm:$0xff]  ;;  %v344_v27 = vld [vmem:[%s4277_s2 + $0x48] sm:$0xff]  ;;  %v345_v28 = vld [vmem:[%s4277_s2 + $0x50] sm:$0xff] }
  0x1f   : > { %733 = vperm.xlu1 %2671, %v338_v17   ;;  %v346_v29 = vld [vmem:[%s4277_s2 + $0x58] sm:$0xff]  ;;  %v2697_v30 = vld [vmem:[%s3128_s28 + $0x8] sm:$0xff]   ;;  %v347_v31 = vld [vmem:[%s4277_s2 + $0x60] sm:$0xff] }
  0x20   : > { %568 = vmatpush1.bf16.msra.mxu0 %v2680_v6  ;;  %v348_v32 = vld [vmem:[%s4277_s2 + $0x68] sm:$0xff]  ;;  %v349_v33 = vld [vmem:[%s4277_s2 + $0x70] sm:$0xff]  ;;  %v350_v34 = vld [vmem:[%s4277_s2 + $0x78] sm:$0xff]  ;;  %v3300_v6 = vshrl.u32 %v413_v5, 7 }
  0x21   : > { %569 = vmatprep.subr.bf16.mxu0 %v2681_v7  ;;  %v2698_v35 = vld [vmem:[%s3128_s28 + $0x10] sm:$0xff]   ;;  %v351_v36 = vld [vmem:[%s4277_s2 + $0x80] sm:$0xff]  ;;  %v352_v37 = vld [vmem:[%s4277_s2 + $0x88] sm:$0xff] }
  0x22   : > { %738 = vperm.xlu0 %2670, %v339_v18   ;;  %v353_v38 = vld [vmem:[%s4277_s2 + $0x90] sm:$0xff]  ;;  %v354_v39 = vld [vmem:[%s4277_s2 + $0x98] sm:$0xff]  ;;  %v355_v41 = vld [vmem:[%s4281_s6] sm:$0xff]  ;;  %v415_v7 = vsub.s32 0, %v3300_v6 }
  0x23   : > { %743 = vperm.xlu1 %2671, %v340_v21   ;;  %v2699_v40 = vld [vmem:[%s3128_s28 + $0x18] sm:$0xff]   ;;  %v356_v42 = vld [vmem:[%s4281_s6 + $0x8] sm:$0xff]  ;;  %v357_v43 = vld [vmem:[%s4281_s6 + $0x10] sm:$0xff] }
  0x24   : > { %570 = vmatpush1.bf16.msra.mxu0 %v2683_v8  ;;  %v358_v44 = vld [vmem:[%s4281_s6 + $0x18] sm:$0xff]  ;;  %v2700_v45 = vld [vmem:[%s3128_s28 + $0x20] sm:$0xff]   ;;  %v360_v47 = vld [vmem:[%s4281_s6 + $0x28] sm:$0xff] }
  0x25   : > { %571 = vmatprep.subr.bf16.mxu0 %v2684_v9  ;;  %v359_v46 = vld [vmem:[%s4281_s6 + $0x20] sm:$0xff]  ;;  %v361_v48 = vld [vmem:[%s4281_s6 + $0x30] sm:$0xff]  ;;  %v362_v49 = vld [vmem:[%s4281_s6 + $0x38] sm:$0xff] }
  0x26   : > { %748 = vperm.xlu0 %2670, %v341_v22   ;;  %v2701_v50 = vld [vmem:[%s3128_s28 + $0x28] sm:$0xff]   ;;  %v363_v51 = vld [vmem:[%s4281_s6 + $0x40] sm:$0xff]  ;;  %v365_v53 = vld [vmem:[%s4281_s6 + $0x50] sm:$0xff] }
  0x27   : > { %753 = vperm.xlu1 %2671, %v342_v24   ;;  %v364_v52 = vld [vmem:[%s4281_s6 + $0x48] sm:$0xff]  ;;  %v366_v54 = vld [vmem:[%s4281_s6 + $0x58] sm:$0xff]  ;;  %v2702_v55 = vld [vmem:[%s3128_s28 + $0x30] sm:$0xff]  }
  0x28   : > { %572 = vmatpush1.bf16.msra.mxu0 %v2686_v10  ;;  %v367_v56 = vld [vmem:[%s4281_s6 + $0x60] sm:$0xff]  ;;  %v368_v57 = vld [vmem:[%s4281_s6 + $0x68] sm:$0xff]  ;;  %v369_v58 = vld [vmem:[%s4281_s6 + $0x70] sm:$0xff] }
  0x29   : > { %573 = vmatprep.subr.bf16.mxu0 %v2687_v11  ;;  %v370_v59 = vld [vmem:[%s4281_s6 + $0x78] sm:$0xff]  ;;  %v371_v61 = vld [vmem:[%s4281_s6 + $0x80] sm:$0xff]  ;;  %v372_v62 = vld [vmem:[%s4281_s6 + $0x88] sm:$0xff] }
  0x2a   : > { %758 = vperm.xlu0 %2670, %v343_v26   ;;  %v2703_v60 = vld [vmem:[%s3128_s28 + $0x38] sm:$0xff]   ;;  %v373_v63 = vld [vmem:[%s4281_s6 + $0x90] sm:$0xff]  ;;  %v2704_v1 = vld [vmem:[%s3128_s28 + $0x40] sm:$0xff]  }
  0x2b   : > { %763 = vperm.xlu1 %2671, %v344_v27   ;;  %v374_v0 = vld [vmem:[%s4281_s6 + $0x98] sm:$0xff]  ;;  %v2705_v3 = vld [vmem:[%s3128_s28 + $0x48] sm:$0xff]   ;;  %v411_v8 = vld [vmem:[%s4279_s4] sm:$0x3]  ;;  %s324_s28 = sand.u32 1, %s2988_s10  }
  0x2c   : > { %574 = vmatpush1.bf16.msra.mxu0 %v2689_v15  ;;  %v2708_v4 = vld [vmem:[%s4276_s1 + $0x4] ss:$8 sps:$4 sm:$0xff]   ;;  %v3309_v9 = vrot.slane %v411_v8, %v415_v7  ;;  %s2627_s16 = smul.u32 320, %s324_s28  ;;  %s4234_s13 = scalar_lea.sflag [#allocation3], %s324_s28 }
  0x2d   : > { %575 = vmatprep.subr.bf16.mxu0 %v2690_v16  ;;  %2548 = vmatprep.mubr.msk.bf16.mxu1 %vm966_vm0, %v2708_v4 }
  0x2e   : > { %768 = vperm.xlu0 %2670, %v345_v28   ;;  %s4125_s21 = scalar_lea.vmem [#allocation2], %s2627_s16 }
  0x2f   : > { %773 = vperm.xlu1 %2671, %v346_v29   ;;  %s2435_s24 = sshll.u32 %s4125_s21, 4  ;;  %s4224_s24 = int_to_ptr.vmem [resolvable:$true] %s2435_s24 }
  0x30   : > { %576 = vmatpush1.bf16.msra.mxu0 %v2692_v19  ;;  %s2934_s27 = scalar_lea.vmem %s4224_s24, 5120  ;;  %p2941_p0 = scmp.lt.s32.totalorder %s4224_s24, %s2939_s14 }
  0x31   : > { %577 = vmatprep.subr.bf16.mxu0 %v2693_v20  ;;  %p2935_p11 = scmp.ne.s32.totalorder %s4224_s24, %s2934_s27  ;;  %p2942_p1 = scmp.lt.s32.totalorder %s2940_s23, %s2934_s27 }
  0x32   : > { %778 = vperm.xlu0 %2670, %v347_v31  }
  0x33   : > { %783 = vperm.xlu1 %2671, %v348_v32   ;;  %p2936_p12 = pnand %p2935_p11, %p3090_p5  ;;  %p2943_p2 = por %p2942_p1, %p2941_p0 }
  0x34   : > { %578 = vmatpush1.bf16.msra.mxu0 %v2695_v23 }
  0x35   : > { %p2937_p13 = pneg %p2936_p12 }
  0x36   : > { %788 = vperm.xlu0 %2670, %v349_v33  }
  0x37   : > { %596 = vmatmul.mubr.bf16.vlgmr.msra.gmra.mrb[0].mxu0 %v2696_v25  ;;  %793 = vperm.xlu1 %2671, %v350_v34   ;;  %p2944_p3 = pnand %p2943_p2, %p2937_p13 }
  0x38   : > { %605 = vmatprep.mubr.bf16.mxu0 %v2998_v2 }
  0x3a   : > { %798 = vperm.xlu0 %2670, %v351_v36  }
  0x3b   : > { %803 = vperm.xlu1 %2671, %v352_v37  }
  0x3e   : > { %808 = vperm.xlu0 %2670, %v353_v38  }
  0x3f   : > { %606 = vmatmul.mubr.bf16.gmra.mrb[4].mxu0 %v2697_v30  ;;  %813 = vperm.xlu1 %2671, %v354_v39  }
  0x40   : > { %615 = vmatprep.mubr.bf16.mxu0 %v2998_v2 }
  0x42   : > { %1549 = vperm.xlu0 %2670, %v355_v41  }
  0x43   : > { %1554 = vperm.xlu1 %2671, %v356_v42  }
  0x46   : > { %1559 = vperm.xlu0 %2670, %v357_v43  }
  0x47   : > { %616 = vmatmul.mubr.bf16.gmra.mrb[8].mxu0 %v2698_v35  ;;  %1564 = vperm.xlu1 %2671, %v358_v44  }
  0x48   : > { %625 = vmatprep.mubr.bf16.mxu0 %v2998_v2 }
  0x4a   : > { %1569 = vperm.xlu0 %2670, %v359_v46  }
  0x4b   : > { %1574 = vperm.xlu1 %2671, %v360_v47  }
  0x4e   : > { %1579 = vperm.xlu0 %2670, %v361_v48  }
  0x4f   : > { %626 = vmatmul.mubr.bf16.gmra.mrb[12].mxu0 %v2699_v40  ;;  %1584 = vperm.xlu1 %2671, %v362_v49  }
  0x50   : > { %635 = vmatprep.mubr.bf16.mxu0 %v2998_v2 }
  0x52   : > { %1589 = vperm.xlu0 %2670, %v363_v51  }
  0x53   : > { %1594 = vperm.xlu1 %2671, %v364_v52  }
  0x56   : > { %1599 = vperm.xlu0 %2670, %v365_v53  }
  0x57   : > { %636 = vmatmul.mubr.bf16.gmra.mrb[16].mxu0 %v2700_v45  ;;  %1604 = vperm.xlu1 %2671, %v366_v54  }
  0x58   : > { %645 = vmatprep.mubr.bf16.mxu0 %v2998_v2 }
  0x5a   : > { %1609 = vperm.xlu0 %2670, %v367_v56  }
  0x5b   : > { %1614 = vperm.xlu1 %2671, %v368_v57  }
  0x5e   : > { %1619 = vperm.xlu0 %2670, %v369_v58  }
  0x5f   : > { %646 = vmatmul.mubr.bf16.gmra.mrb[20].mxu0 %v2701_v50  ;;  %1624 = vperm.xlu1 %2671, %v370_v59  }
  0x60   : > { %655 = vmatprep.mubr.bf16.mxu0 %v2998_v2 }
  0x62   : > { %1629 = vperm.xlu0 %2670, %v371_v61  }
  0x63   : > { %1634 = vperm.xlu1 %2671, %v372_v62  }
  0x66   : > { %1639 = vperm.xlu0 %2670, %v373_v63  }
  0x67   : > { %656 = vmatmul.mubr.bf16.gmra.mrb[24].mxu0 %v2702_v55  ;;  %1644 = vperm.xlu1 %2671, %v374_v0  }
  0x68   : > { %665 = vmatprep.mubr.bf16.mxu0 %v2998_v2 }
  0x6f   : > { %666 = vmatmul.mubr.bf16.gmra.mrb[28].mxu0 %v2703_v60 }
  0x70   : > { %675 = vmatprep.mubr.bf16.mxu0 %v2998_v2 }
  0x77   : > { %676 = vmatmul.mubr.bf16.gmra.mrb[32].mxu0 %v2704_v1 }
  0x78   : > { %685 = vmatprep.mubr.bf16.mxu0 %v2998_v2  ;;  %v419_v2 = vsub.s32 1, %v3300_v6 }
  0x7a   : > { %v3315_v11 = vrot.slane %v411_v8, %v419_v2 }
  0x7f   : > { %686 = vmatmul.mubr.bf16.gmra.mrb[36].mxu0 %v2705_v3 }
  0x99   : > { %v3311_v10 = vpop.permute.xlu0 %718 }
  0x9a   : > { %v3325_v23 = vpop.permute.xlu1 %728 }
  0x9d   : > { %v3320_v19 = vpop.permute.xlu0 %723 }
  0x9e   : > { %v3332_v35 = vpop.permute.xlu1 %733 }
  0xa1   : > { %v3342_v50 = vpop.permute.xlu0 %738 }
  0xa2   : > { %v3344_v51 = vpop.permute.xlu1 %743 }
  0xa5   : > { %v3354_v3 = vpop.permute.xlu0 %748 }
  0xa6   : > { %v3356_v4 = vpop.permute.xlu1 %753 }
 0x10a   : > { %v597_v12 = vpop.f32.mrb[0].mxu0 }
 0x10b   : > { %v598_v13 = vadd.f32 %v597_v12, %v3309_v9  ;;  %v599_v14 = vpop.f32.mrb[1].mxu0 }
 0x10c   : > { %v600_v15 = vadd.f32 %v599_v14, %v3315_v11  ;;  %v601_v16 = vpop.f32.mrb[2].mxu0 }
 0x10d   : > { %v602_v17 = vadd.f32 %v601_v16, %v3309_v9  ;;  %v603_v18 = vpop.f32.mrb[3].mxu0  ;;  %v816_v21 = vmul.f32 %v3311_v10, %v598_v13  ;;  %v2738_v16 = vld [vmem:[%s4282_s7 + $0x4] ss:$8 sps:$4 sm:$0xff]  }
 0x10e   : > { %v604_v20 = vadd.f32 %v603_v18, %v3315_v11  ;;  %v817_v24 = vmul.f32 %v3311_v10, %v600_v15  ;;  %v2736_v15 = vld [vmem:[%s4282_s7] ss:$8 sps:$4 sm:$0xff]   ;;  %v2741_v18 = vld [vmem:[%s4282_s7 + $0x14] ss:$8 sps:$4 sm:$0xff]   ;;  %1394 = vmatprep.subr.bf16.mxu0 %v2738_v16 }
 0x10f   : > { %v818_v22 = vmul.f32 %v3320_v19, %v602_v17  ;;  %1395 = vmatpush1.bf16.msra.mxu0 %v2736_v15  ;;  %v2756_v15 = vld [vmem:[%s4282_s7 + $0x64] ss:$8 sps:$4 sm:$0xff]  }
 0x110   : > { %v819_v25 = vmul.f32 %v3320_v19, %v604_v20  ;;  %1396 = vmatprep.subr.bf16.mxu0 %v2741_v18 }
 0x111   : > { %v856_v26 = vpack.c.bf16 %v818_v22, %v816_v21 }
 0x112   : > { %v607_v27 = vpop.f32.mrb[4].mxu0  ;;  %v857_v28 = vpack.c.bf16 %v819_v25, %v817_v24  ;;  %v2739_v25 = vld [vmem:[%s4282_s7 + $0x10] ss:$8 sps:$4 sm:$0xff]  }
 0x113   : > { %v608_v29 = vadd.f32 %v607_v27, %v3309_v9  ;;  %v609_v30 = vpop.f32.mrb[5].mxu0  ;;  %1397 = vmatpush1.bf16.msra.mxu0 %v2739_v25  ;;  %v2754_v25 = vld [vmem:[%s4282_s7 + $0x60] ss:$8 sps:$4 sm:$0xff]  }
 0x114   : > { %v610_v31 = vadd.f32 %v609_v30, %v3315_v11  ;;  %v611_v32 = vpop.f32.mrb[6].mxu0  ;;  %997 = vmatprep.subr.bf16.mxu1 %v857_v28  ;;  %v2744_v28 = vld [vmem:[%s4282_s7 + $0x24] ss:$8 sps:$4 sm:$0xff]  }
 0x115   : > { %v612_v33 = vadd.f32 %v611_v32, %v3309_v9  ;;  %v613_v34 = vpop.f32.mrb[7].mxu0  ;;  %998 = vmatpush1.bf16.msra.mxu1 %v856_v26  ;;  %v820_v37 = vmul.f32 %v3325_v23, %v608_v29  ;;  %v3383_v32 = vpop.permute.xlu1 %763  ;;  %1398 = vmatprep.subr.bf16.mxu0 %v2744_v28  ;;  %v2759_v28 = vld [vmem:[%s4282_s7 + $0x74] ss:$8 sps:$4 sm:$0xff]  }
 0x116   : > { %v614_v36 = vadd.f32 %v613_v34, %v3315_v11  ;;  %v821_v39 = vmul.f32 %v3325_v23, %v610_v31  ;;  %v3381_v31 = vpop.permute.xlu0 %758 }
 0x117   : > { %v822_v38 = vmul.f32 %v3332_v35, %v612_v33 }
 0x118   : > { %v823_v40 = vmul.f32 %v3332_v35, %v614_v36 }
 0x119   : > { %v858_v41 = vpack.c.bf16 %v822_v38, %v820_v37  ;;  %v2742_v37 = vld [vmem:[%s4282_s7 + $0x20] ss:$8 sps:$4 sm:$0xff]  }
 0x11a   : > { %v617_v42 = vpop.f32.mrb[8].mxu0  ;;  %v859_v43 = vpack.c.bf16 %v823_v40, %v821_v39  ;;  %v2747_v40 = vld [vmem:[%s4282_s7 + $0x34] ss:$8 sps:$4 sm:$0xff]   ;;  %1399 = vmatpush1.bf16.msra.mxu0 %v2742_v37  ;;  %v2757_v37 = vld [vmem:[%s4282_s7 + $0x70] ss:$8 sps:$4 sm:$0xff]  }
 0x11b   : > { %v618_v44 = vadd.f32 %v617_v42, %v3309_v9  ;;  %v619_v45 = vpop.f32.mrb[9].mxu0  ;;  %1400 = vmatprep.subr.bf16.mxu0 %v2747_v40  ;;  %v2762_v40 = vld [vmem:[%s4282_s7 + $0x84] ss:$8 sps:$4 sm:$0xff]  }
 0x11c   : > { %v620_v46 = vadd.f32 %v619_v45, %v3315_v11  ;;  %v621_v47 = vpop.f32.mrb[10].mxu0  ;;  %999 = vmatprep.subr.bf16.mxu1 %v859_v43 }
 0x11d   : > { %v622_v48 = vadd.f32 %v621_v47, %v3309_v9  ;;  %v623_v49 = vpop.f32.mrb[11].mxu0  ;;  %1000 = vmatpush1.bf16.msra.mxu1 %v858_v41  ;;  %v824_v53 = vmul.f32 %v3342_v50, %v618_v44 }
 0x11e   : > { %v624_v52 = vadd.f32 %v623_v49, %v3315_v11  ;;  %v825_v55 = vmul.f32 %v3342_v50, %v620_v46  ;;  %v2745_v46 = vld [vmem:[%s4282_s7 + $0x30] ss:$8 sps:$4 sm:$0xff]   ;;  %v2750_v49 = vld [vmem:[%s4282_s7 + $0x44] ss:$8 sps:$4 sm:$0xff]  }
 0x11f   : > { %v826_v54 = vmul.f32 %v3344_v51, %v622_v48  ;;  %1401 = vmatpush1.bf16.msra.mxu0 %v2745_v46 }
 0x120   : > { %v827_v56 = vmul.f32 %v3344_v51, %v624_v52  ;;  %1402 = vmatprep.subr.bf16.mxu0 %v2750_v49 }
 0x121   : > { %v860_v57 = vpack.c.bf16 %v826_v54, %v824_v53  ;;  %v3405_v54 = vpop.permute.xlu0 %768 }
 0x122   : > { %v627_v58 = vpop.f32.mrb[12].mxu0  ;;  %v861_v59 = vpack.c.bf16 %v827_v56, %v825_v55  ;;  %v3407_v55 = vpop.permute.xlu1 %773 }
 0x123   : > { %v628_v60 = vadd.f32 %v627_v58, %v3309_v9  ;;  %v629_v61 = vpop.f32.mrb[13].mxu0 }
 0x124   : > { %v630_v62 = vadd.f32 %v629_v61, %v3315_v11  ;;  %v631_v63 = vpop.f32.mrb[14].mxu0  ;;  %1001 = vmatprep.subr.bf16.mxu1 %v861_v59  ;;  %v2748_v59 = vld [vmem:[%s4282_s7 + $0x40] ss:$8 sps:$4 sm:$0xff]  }
 0x125   : > { %v632_v0 = vadd.f32 %v631_v63, %v3309_v9  ;;  %v633_v1 = vpop.f32.mrb[15].mxu0  ;;  %1002 = vmatpush1.bf16.msra.mxu1 %v860_v57  ;;  %v828_v8 = vmul.f32 %v3354_v3, %v628_v60  ;;  %1403 = vmatpush1.bf16.msra.mxu0 %v2748_v59  ;;  %v3429_v18 = vpop.permute.xlu0 %778 }
 0x126   : > { %v634_v5 = vadd.f32 %v633_v1, %v3315_v11  ;;  %v829_v13 = vmul.f32 %v3354_v3, %v630_v62  ;;  %v2753_v62 = vld [vmem:[%s4282_s7 + $0x54] ss:$8 sps:$4 sm:$0xff]  }
 0x127   : > { %v830_v12 = vmul.f32 %v3356_v4, %v632_v0  ;;  %1404 = vmatprep.subr.bf16.mxu0 %v2753_v62 }
 0x128   : > { %v831_v14 = vmul.f32 %v3356_v4, %v634_v5 }
 0x129   : > { %v862_v17 = vpack.c.bf16 %v830_v12, %v828_v8  ;;  %v2751_v12 = vld [vmem:[%s4282_s7 + $0x50] ss:$8 sps:$4 sm:$0xff]  }
 0x12a   : > { %v637_v20 = vpop.f32.mrb[16].mxu0  ;;  %v863_v21 = vpack.c.bf16 %v831_v14, %v829_v13  ;;  %1405 = vmatpush1.bf16.msra.mxu0 %v2751_v12 }
 0x12b   : > { %v638_v22 = vadd.f32 %v637_v20, %v3309_v9  ;;  %v639_v24 = vpop.f32.mrb[17].mxu0  ;;  %v3431_v20 = vpop.permute.xlu1 %783  ;;  %1406 = vmatprep.subr.bf16.mxu0 %v2756_v15 }
 0x12c   : > { %v640_v26 = vadd.f32 %v639_v24, %v3315_v11  ;;  %v641_v27 = vpop.f32.mrb[18].mxu0  ;;  %1003 = vmatprep.subr.bf16.mxu1 %v863_v21 }
 0x12d   : > { %v642_v29 = vadd.f32 %v641_v27, %v3309_v9  ;;  %v643_v30 = vpop.f32.mrb[19].mxu0  ;;  %1004 = vmatpush1.bf16.msra.mxu1 %v862_v17  ;;  %v832_v34 = vmul.f32 %v3381_v31, %v638_v22 }
 0x12e   : > { %v644_v33 = vadd.f32 %v643_v30, %v3315_v11  ;;  %v833_v38 = vmul.f32 %v3381_v31, %v640_v26  ;;  %1407 = vmatpush1.bf16.msra.mxu0 %v2754_v25 }
 0x12f   : > { %v834_v36 = vmul.f32 %v3383_v32, %v642_v29  ;;  %1408 = vmatprep.subr.bf16.mxu0 %v2759_v28 }
 0x130   : > { %v835_v39 = vmul.f32 %v3383_v32, %v644_v33 }
 0x131   : > { %v864_v41 = vpack.c.bf16 %v834_v36, %v832_v34 }
 0x132   : > { %v647_v42 = vpop.f32.mrb[20].mxu0  ;;  %v865_v43 = vpack.c.bf16 %v835_v39, %v833_v38  ;;  %1409 = vmatpush1.bf16.msra.mxu0 %v2757_v37 }
 0x133   : > { %v648_v44 = vadd.f32 %v647_v42, %v3309_v9  ;;  %v649_v45 = vpop.f32.mrb[21].mxu0  ;;  %1410 = vmatprep.subr.bf16.mxu0 %v2762_v40 }
 0x134   : > { %v650_v47 = vadd.f32 %v649_v45, %v3315_v11  ;;  %v651_v48 = vpop.f32.mrb[22].mxu0  ;;  %1005 = vmatprep.subr.bf16.mxu1 %v865_v43  ;;  %v3453_v43 = vpop.permute.xlu0 %788 }
 0x135   : > { %v652_v52 = vadd.f32 %v651_v48, %v3309_v9  ;;  %v653_v53 = vpop.f32.mrb[23].mxu0  ;;  %1006 = vmatpush1.bf16.msra.mxu1 %v864_v41  ;;  %v836_v57 = vmul.f32 %v3405_v54, %v648_v44  ;;  %v3455_v44 = vpop.permute.xlu1 %793  ;;  %v2760_v48 = vld [vmem:[%s4282_s7 + $0x80] ss:$8 sps:$4 sm:$0xff]  }
 0x136   : > { %v654_v56 = vadd.f32 %v653_v53, %v3315_v11  ;;  %v837_v60 = vmul.f32 %v3405_v54, %v650_v47  ;;  %v2765_v53 = vld [vmem:[%s4282_s7 + $0x94] ss:$8 sps:$4 sm:$0xff]   ;;  %1411 = vmatpush1.bf16.msra.mxu0 %v2760_v48 }
 0x137   : > { %v838_v58 = vmul.f32 %v3407_v55, %v652_v52  ;;  %1412 = vmatprep.subr.bf16.mxu0 %v2765_v53  ;;  %v2709_v53 = vld [vmem:[%s4276_s1 + $0x14] ss:$8 sps:$4 sm:$0xff]  }
 0x138   : > { %v839_v61 = vmul.f32 %v3407_v55, %v654_v56 }
 0x139   : > { %v866_v63 = vpack.c.bf16 %v838_v58, %v836_v57  ;;  %v3479_v12 = vpop.permute.xlu1 %803 }
 0x13a   : > { %v657_v0 = vpop.f32.mrb[24].mxu0  ;;  %v867_v1 = vpack.c.bf16 %v839_v61, %v837_v60  ;;  %v2763_v61 = vld [vmem:[%s4282_s7 + $0x90] ss:$8 sps:$4 sm:$0xff]  }
 0x13b   : > { %v658_v5 = vadd.f32 %v657_v0, %v3309_v9  ;;  %v659_v8 = vpop.f32.mrb[25].mxu0  ;;  %v2768_v0 = vld [vmem:[%s4282_s7 + $0xa4] ss:$8 sps:$4 sm:$0xff]   ;;  %1413 = vmatpush1.bf16.msra.mxu0 %v2763_v61 }
 0x13c   : > { %v660_v13 = vadd.f32 %v659_v8, %v3315_v11  ;;  %v661_v14 = vpop.f32.mrb[26].mxu0  ;;  %1007 = vmatprep.subr.bf16.mxu1 %v867_v1  ;;  %v3477_v8 = vpop.permute.xlu0 %798  ;;  %1414 = vmatprep.subr.bf16.mxu0 %v2768_v0  ;;  %v2718_v61 = vld [vmem:[%s4276_s1 + $0x44] ss:$8 sps:$4 sm:$0xff]   ;;  %v2723_v0 = vld [vmem:[%s4276_s1 + $0x50] ss:$8 sps:$4 sm:$0xff]  }
 0x13d   : > { %v662_v16 = vadd.f32 %v661_v14, %v3309_v9  ;;  %v663_v17 = vpop.f32.mrb[27].mxu0  ;;  %1008 = vmatpush1.bf16.msra.mxu1 %v866_v63  ;;  %v840_v22 = vmul.f32 %v3429_v18, %v658_v5 }
 0x13e   : > { %v664_v21 = vadd.f32 %v663_v17, %v3315_v11  ;;  %v841_v26 = vmul.f32 %v3429_v18, %v660_v13 }
 0x13f   : > { %v842_v24 = vmul.f32 %v3431_v20, %v662_v16  ;;  %v2766_v16 = vld [vmem:[%s4282_s7 + $0xa0] ss:$8 sps:$4 sm:$0xff]  }
 0x140   : > { %v843_v27 = vmul.f32 %v3431_v20, %v664_v21  ;;  %1415 = vmatpush1.bf16.msra.mxu0 %v2766_v16  ;;  %v2732_v16 = vld [vmem:[%s4276_s1 + $0x80] ss:$8 sps:$4 sm:$0xff]  }
 0x141   : > { %v868_v29 = vpack.c.bf16 %v842_v24, %v840_v22  ;;  %v2771_v22 = vld [vmem:[%s4282_s7 + $0xb4] ss:$8 sps:$4 sm:$0xff]  }
 0x142   : > { %v667_v30 = vpop.f32.mrb[28].mxu0  ;;  %v869_v33 = vpack.c.bf16 %v843_v27, %v841_v26  ;;  %1416 = vmatprep.subr.bf16.mxu0 %v2771_v22  ;;  %v2780_v22 = vld [vmem:[%s4282_s7 + $0xe4] ss:$8 sps:$4 sm:$0xff]  }
 0x143   : > { %v668_v34 = vadd.f32 %v667_v30, %v3309_v9  ;;  %v669_v36 = vpop.f32.mrb[29].mxu0 }
 0x144   : > { %v670_v38 = vadd.f32 %v669_v36, %v3315_v11  ;;  %v671_v39 = vpop.f32.mrb[30].mxu0  ;;  %1009 = vmatprep.subr.bf16.mxu1 %v869_v33 }
 0x145   : > { %v672_v41 = vadd.f32 %v671_v39, %v3309_v9  ;;  %v673_v42 = vpop.f32.mrb[31].mxu0  ;;  %1010 = vmatpush1.bf16.msra.mxu1 %v868_v29  ;;  %v844_v46 = vmul.f32 %v3453_v43, %v668_v34  ;;  %v2769_v29 = vld [vmem:[%s4282_s7 + $0xb0] ss:$8 sps:$4 sm:$0xff]   ;;  %v2774_v34 = vld [vmem:[%s4282_s7 + $0xc4] ss:$8 sps:$4 sm:$0xff]   ;;  %v3503_v39 = vpop.permute.xlu1 %813 }
 0x146   : > { %v674_v45 = vadd.f32 %v673_v42, %v3315_v11  ;;  %v845_v49 = vmul.f32 %v3453_v43, %v670_v38  ;;  %v3501_v38 = vpop.permute.xlu0 %808  ;;  %1417 = vmatpush1.bf16.msra.mxu0 %v2769_v29 }
 0x147   : > { %v846_v47 = vmul.f32 %v3455_v44, %v672_v41  ;;  %1418 = vmatprep.subr.bf16.mxu0 %v2774_v34 }
 0x148   : > { %v847_v52 = vmul.f32 %v3455_v44, %v674_v45  ;;  %v2772_v45 = vld [vmem:[%s4282_s7 + $0xc0] ss:$8 sps:$4 sm:$0xff]  }
 0x149   : > { %v870_v56 = vpack.c.bf16 %v846_v47, %v844_v46  ;;  %v2777_v47 = vld [vmem:[%s4282_s7 + $0xd4] ss:$8 sps:$4 sm:$0xff]  }
 0x14a   : > { %v677_v57 = vpop.f32.mrb[32].mxu0  ;;  %v871_v58 = vpack.c.bf16 %v847_v52, %v845_v49  ;;  %1419 = vmatpush1.bf16.msra.mxu0 %v2772_v45  ;;  %v2775_v49 = vld [vmem:[%s4282_s7 + $0xd0] ss:$8 sps:$4 sm:$0xff]   ;;  %v2706_v52 = vld [vmem:[%s4276_s1] ss:$8 sps:$4 sm:$0xff]  }
 0x14b   : > { %v678_v59 = vadd.f32 %v677_v57, %v3309_v9  ;;  %v679_v60 = vpop.f32.mrb[33].mxu0  ;;  %1420 = vmatprep.subr.bf16.mxu0 %v2777_v47  ;;  %v2712_v57 = vld [vmem:[%s4276_s1 + $0x24] ss:$8 sps:$4 sm:$0xff]  }
 0x14c   : > { %v680_v62 = vadd.f32 %v679_v60, %v3315_v11  ;;  %v681_v63 = vpop.f32.mrb[34].mxu0  ;;  %1011 = vmatprep.subr.bf16.mxu1 %v871_v58  ;;  %v2714_v58 = vld [vmem:[%s4276_s1 + $0x20] ss:$8 sps:$4 sm:$0xff]   ;;  %v2717_v60 = vld [vmem:[%s4276_s1 + $0x30] ss:$8 sps:$4 sm:$0xff]  }
 0x14d   : > { %v682_v1 = vadd.f32 %v681_v63, %v3309_v9  ;;  %v683_v5 = vpop.f32.mrb[35].mxu0  ;;  %1012 = vmatpush1.bf16.msra.mxu1 %v870_v56  ;;  %v848_v14 = vmul.f32 %v3477_v8, %v678_v59  ;;  %v2711_v56 = vld [vmem:[%s4276_s1 + $0x10] ss:$8 sps:$4 sm:$0xff]   ;;  %v2715_v59 = vld [vmem:[%s4276_s1 + $0x34] ss:$8 sps:$4 sm:$0xff]  }
 0x14e   : > { %v684_v13 = vadd.f32 %v683_v5, %v3315_v11  ;;  %v849_v17 = vmul.f32 %v3477_v8, %v680_v62  ;;  %1421 = vmatpush1.bf16.msra.mxu0 %v2775_v49  ;;  %v2720_v62 = vld [vmem:[%s4276_s1 + $0x40] ss:$8 sps:$4 sm:$0xff]   ;;  %v2721_v63 = vld [vmem:[%s4276_s1 + $0x54] ss:$8 sps:$4 sm:$0xff]  }
 0x14f   : > { %v850_v15 = vmul.f32 %v3479_v12, %v682_v1  ;;  %v2724_v1 = vld [vmem:[%s4276_s1 + $0x64] ss:$8 sps:$4 sm:$0xff]   ;;  %v2726_v5 = vld [vmem:[%s4276_s1 + $0x60] ss:$8 sps:$4 sm:$0xff]   ;;  %1422 = vmatprep.subr.bf16.mxu0 %v2780_v22 }
 0x150   : > { %v851_v21 = vmul.f32 %v3479_v12, %v684_v13  ;;  %v2727_v13 = vld [vmem:[%s4276_s1 + $0x74] ss:$8 sps:$4 sm:$0xff]  }
 0x151   : > { %v872_v24 = vpack.c.bf16 %v850_v15, %v848_v14  ;;  %v2729_v14 = vld [vmem:[%s4276_s1 + $0x70] ss:$8 sps:$4 sm:$0xff]   ;;  %v2730_v15 = vld [vmem:[%s4276_s1 + $0x84] ss:$8 sps:$4 sm:$0xff]  }
 0x152   : > { %v687_v25 = vpop.f32.mrb[36].mxu0  ;;  %v873_v26 = vpack.c.bf16 %v851_v21, %v849_v17  ;;  %v2733_v17 = vld [vmem:[%s4276_s1 + $0x94] ss:$8 sps:$4 sm:$0xff]   ;;  %v2735_v21 = vld [vmem:[%s4276_s1 + $0x90] ss:$8 sps:$4 sm:$0xff]  }
 0x153   : > { %v688_v27 = vadd.f32 %v687_v25, %v3309_v9  ;;  %v689_v28 = vpop.f32.mrb[37].mxu0  ;;  %v2783_v25 = vld [vmem:[%s4282_s7 + $0xf4] ss:$8 sps:$4 sm:$0xff]  }
 0x154   : > { %v690_v30 = vadd.f32 %v689_v28, %v3315_v11  ;;  %v691_v33 = vpop.f32.mrb[38].mxu0  ;;  %1013 = vmatprep.subr.bf16.mxu1 %v873_v26  ;;  %v2781_v26 = vld [vmem:[%s4282_s7 + $0xf0] ss:$8 sps:$4 sm:$0xff]  }
 0x155   : > { %v692_v36 = vadd.f32 %v691_v33, %v3309_v9  ;;  %v693_v37 = vpop.f32.mrb[39].mxu0  ;;  %1014 = vmatpush1.bf16.msra.mxu1 %v872_v24  ;;  %v852_v41 = vmul.f32 %v3501_v38, %v688_v27  ;;  %v2778_v24 = vld [vmem:[%s4282_s7 + $0xe0] ss:$8 sps:$4 sm:$0xff]  }
 0x156   : > { %v694_v40 = vadd.f32 %v693_v37, %v3315_v11  ;;  %v853_v46 = vmul.f32 %v3501_v38, %v690_v30  ;;  %1423 = vmatpush1.bf16.msra.mxu0 %v2778_v24 }
 0x157   : > { %v854_v42 = vmul.f32 %v3503_v39, %v692_v36  ;;  %1424 = vmatprep.subr.bf16.mxu0 %v2783_v25 }
 0x158   : > { %v855_v9 = vmul.f32 %v3503_v39, %v694_v40 }
 0x159   : > { %v874_v48 = vpack.c.bf16 %v854_v42, %v852_v41 }
 0x15a   : > { %v875_v11 = vpack.c.bf16 %v855_v9, %v853_v46  ;;  %1425 = vmatpush1.bf16.msra.mxu0 %v2781_v26 }
 0x15c   : > { %1015 = vmatprep.subr.bf16.mxu1 %v875_v11 }
 0x15d   : > { %1016 = vmatpush1.bf16.msra.mxu1 %v874_v48 }
 0x160   : > { %1030 = vmatmul.mubr.bf16.vlgmr.msra.gmra.mrb[0].mxu1 %v2706_v52 }
 0x161   : > { %2549 = vmatprep.mubr.msk.bf16.mxu1 %vm966_vm0, %v2709_v53 }
 0x168   : > { %1040 = vmatmul.mubr.bf16.gmra.mrb[4].mxu1 %v2711_v56 }
 0x169   : > { %2550 = vmatprep.mubr.msk.bf16.mxu1 %vm966_vm0, %v2712_v57 }
 0x170   : > { %1050 = vmatmul.mubr.bf16.gmra.mrb[8].mxu1 %v2714_v58 }
 0x171   : > { %2551 = vmatprep.mubr.msk.bf16.mxu1 %vm966_vm0, %v2715_v59 }
 0x178   : > { %1060 = vmatmul.mubr.bf16.gmra.mrb[12].mxu1 %v2717_v60 }
 0x179   : > { %2552 = vmatprep.mubr.msk.bf16.mxu1 %vm966_vm0, %v2718_v61 }
 0x180   : > { %1070 = vmatmul.mubr.bf16.gmra.mrb[16].mxu1 %v2720_v62 }
 0x181   : > { %2553 = vmatprep.mubr.msk.bf16.mxu1 %vm966_vm0, %v2721_v63 }
 0x188   : > { %1080 = vmatmul.mubr.bf16.gmra.mrb[20].mxu1 %v2723_v0 }
 0x189   : > { %2554 = vmatprep.mubr.msk.bf16.mxu1 %vm966_vm0, %v2724_v1 }
 0x190   : > { %1090 = vmatmul.mubr.bf16.gmra.mrb[24].mxu1 %v2726_v5 }
 0x191   : > { %2555 = vmatprep.mubr.msk.bf16.mxu1 %vm966_vm0, %v2727_v13 }
 0x198   : > { %1100 = vmatmul.mubr.bf16.gmra.mrb[28].mxu1 %v2729_v14 }
 0x199   : > { %2556 = vmatprep.mubr.msk.bf16.mxu1 %vm966_vm0, %v2730_v15 }
 0x1a0   : > { %1110 = vmatmul.mubr.bf16.gmra.mrb[32].mxu1 %v2732_v16 }
 0x1a1   : > { %2557 = vmatprep.mubr.msk.bf16.mxu1 %vm966_vm0, %v2733_v17 }
 0x1a8   : > { %1120 = vmatmul.mubr.bf16.gmra.mrb[36].mxu1 %v2735_v21 }
 0x233   : > { %v1031_v27 = vpop.f32.mrb[0].mxu1 }
 0x234   : > { %v1033_v28 = vpop.f32.mrb[1].mxu1  ;;  %v1130_v30 = vmul.f32 %v1031_v27, %v3311_v10 }
 0x235   : > { %v1035_v29 = vpop.f32.mrb[2].mxu1  ;;  %v1131_v36 = vmul.f32 %v1033_v28, %v3311_v10 }
 0x236   : > { %v1132_v33 = vmul.f32 %v1035_v29, %v3320_v19  ;;  %v1037_v34 = vpop.f32.mrb[3].mxu1 }
 0x237   : > { %v1133_v37 = vmul.f32 %v1037_v34, %v3320_v19 }
 0x238   : > { %v1170_v40 = vpack.c.bf16 %v1132_v33, %v1130_v30 }
 0x239   : > { %v1171_v41 = vpack.c.bf16 %v1133_v37, %v1131_v36 }
 0x23b   : > { %v1041_v42 = vpop.f32.mrb[4].mxu1  ;;  %1426 = vmatprep.mubr.bf16.mxu0 %v1171_v41 }
 0x23c   : > { %v1043_v45 = vpop.f32.mrb[5].mxu1  ;;  %1427 = vmatmul.mubr.bf16.vlgmr.msra.gmra.mrb[40].mxu0 %v1170_v40  ;;  %v1134_v9 = vmul.f32 %v1041_v42, %v3325_v23 }
 0x23d   : > { %v1045_v46 = vpop.f32.mrb[6].mxu1  ;;  %v1135_v11 = vmul.f32 %v1043_v45, %v3325_v23 }
 0x23e   : > { %v1136_v47 = vmul.f32 %v1045_v46, %v3332_v35  ;;  %v1047_v48 = vpop.f32.mrb[7].mxu1 }
 0x23f   : > { %v1137_v49 = vmul.f32 %v1047_v48, %v3332_v35 }
 0x240   : > { %v1172_v52 = vpack.c.bf16 %v1136_v47, %v1134_v9 }
 0x241   : > { %v1173_v10 = vpack.c.bf16 %v1137_v49, %v1135_v11 }
 0x243   : > { %v1051_v53 = vpop.f32.mrb[8].mxu1  ;;  %1436 = vmatprep.mubr.bf16.mxu0 %v1173_v10 }
 0x244   : > { %v1053_v19 = vpop.f32.mrb[9].mxu1  ;;  %1437 = vmatmul.mubr.bf16.gmra.mrb[44].mxu0 %v1172_v52  ;;  %v1138_v57 = vmul.f32 %v1051_v53, %v3342_v50 }
 0x245   : > { %v1055_v56 = vpop.f32.mrb[10].mxu1  ;;  %v1139_v60 = vmul.f32 %v1053_v19, %v3342_v50 }
 0x246   : > { %v1140_v58 = vmul.f32 %v1055_v56, %v3344_v51  ;;  %v1057_v59 = vpop.f32.mrb[11].mxu1 }
 0x247   : > { %v1141_v61 = vmul.f32 %v1057_v59, %v3344_v51 }
 0x248   : > { %v1174_v62 = vpack.c.bf16 %v1140_v58, %v1138_v57 }
 0x249   : > { %v1175_v23 = vpack.c.bf16 %v1141_v61, %v1139_v60 }
 0x24b   : > { %v1061_v63 = vpop.f32.mrb[12].mxu1  ;;  %1446 = vmatprep.mubr.bf16.mxu0 %v1175_v23 }
 0x24c   : > { %v1063_v35 = vpop.f32.mrb[13].mxu1  ;;  %1447 = vmatmul.mubr.bf16.gmra.mrb[48].mxu0 %v1174_v62  ;;  %v1142_v1 = vmul.f32 %v1061_v63, %v3354_v3 }
 0x24d   : > { %v1065_v0 = vpop.f32.mrb[14].mxu1  ;;  %v1143_v14 = vmul.f32 %v1063_v35, %v3354_v3 }
 0x24e   : > { %v1144_v5 = vmul.f32 %v1065_v0, %v3356_v4  ;;  %v1067_v13 = vpop.f32.mrb[15].mxu1 }
 0x24f   : > { %v1145_v15 = vmul.f32 %v1067_v13, %v3356_v4 }
 0x250   : > { %v1176_v16 = vpack.c.bf16 %v1144_v5, %v1142_v1 }
 0x251   : > { %v1177_v50 = vpack.c.bf16 %v1145_v15, %v1143_v14 }
 0x253   : > { %v1071_v17 = vpop.f32.mrb[16].mxu1  ;;  %1456 = vmatprep.mubr.bf16.mxu0 %v1177_v50 }
 0x254   : > { %v1073_v51 = vpop.f32.mrb[17].mxu1  ;;  %1457 = vmatmul.mubr.bf16.gmra.mrb[52].mxu0 %v1176_v16  ;;  %v1146_v22 = vmul.f32 %v1071_v17, %v3381_v31 }
 0x255   : > { %v1075_v21 = vpop.f32.mrb[18].mxu1  ;;  %v1147_v26 = vmul.f32 %v1073_v51, %v3381_v31 }
 0x256   : > { %v1148_v24 = vmul.f32 %v1075_v21, %v3383_v32  ;;  %v1077_v25 = vpop.f32.mrb[19].mxu1  ;;  %v1222_v21 = vld [vmem:[%s4283_s8] sm:$0x3] }
 0x257   : > { %v1149_v27 = vmul.f32 %v1077_v25, %v3383_v32 }
 0x258   : > { %v1178_v28 = vpack.c.bf16 %v1148_v24, %v1146_v22  ;;  %v3646_v22 = vrot.slane %v1222_v21, %v415_v7 }
 0x259   : > { %v1179_v3 = vpack.c.bf16 %v1149_v27, %v1147_v26 }
 0x25b   : > { %v1081_v29 = vpop.f32.mrb[20].mxu1  ;;  %1466 = vmatprep.mubr.bf16.mxu0 %v1179_v3 }
 0x25c   : > { %v1083_v4 = vpop.f32.mrb[21].mxu1  ;;  %1467 = vmatmul.mubr.bf16.gmra.mrb[56].mxu0 %v1178_v28  ;;  %v1150_v33 = vmul.f32 %v1081_v29, %v3405_v54  ;;  %v3655_v29 = vpop.permute.xlu0 %1549 }
 0x25d   : > { %v1085_v30 = vpop.f32.mrb[22].mxu1  ;;  %v1151_v37 = vmul.f32 %v1083_v4, %v3405_v54  ;;  %v3657_v4 = vpop.permute.xlu1 %1554 }
 0x25e   : > { %v1152_v34 = vmul.f32 %v1085_v30, %v3407_v55  ;;  %v1087_v36 = vpop.f32.mrb[23].mxu1 }
 0x25f   : > { %v1153_v40 = vmul.f32 %v1087_v36, %v3407_v55 }
 0x260   : > { %v1180_v41 = vpack.c.bf16 %v1152_v34, %v1150_v33 }
 0x261   : > { %v1181_v31 = vpack.c.bf16 %v1153_v40, %v1151_v37 }
 0x263   : > { %v1091_v42 = vpop.f32.mrb[24].mxu1  ;;  %1476 = vmatprep.mubr.bf16.mxu0 %v1181_v31 }
 0x264   : > { %v1093_v32 = vpop.f32.mrb[25].mxu1  ;;  %1477 = vmatmul.mubr.bf16.gmra.mrb[60].mxu0 %v1180_v41  ;;  %v1154_v46 = vmul.f32 %v1091_v42, %v3429_v18 }
 0x265   : > { %v1095_v45 = vpop.f32.mrb[26].mxu1  ;;  %v1155_v48 = vmul.f32 %v1093_v32, %v3429_v18 }
 0x266   : > { %v1156_v9 = vmul.f32 %v1095_v45, %v3431_v20  ;;  %v1097_v47 = vpop.f32.mrb[27].mxu1 }
 0x267   : > { %v1157_v11 = vmul.f32 %v1097_v47, %v3431_v20 }
 0x268   : > { %v1182_v49 = vpack.c.bf16 %v1156_v9, %v1154_v46  ;;  %v3667_v46 = vpop.permute.xlu0 %1559  ;;  %v3669_v9 = vpop.permute.xlu1 %1564 }
 0x269   : > { %v1183_v54 = vpack.c.bf16 %v1157_v11, %v1155_v48 }
 0x26b   : > { %v1101_v52 = vpop.f32.mrb[28].mxu1  ;;  %1486 = vmatprep.mubr.bf16.mxu0 %v1183_v54 }
 0x26c   : > { %v1103_v55 = vpop.f32.mrb[29].mxu1  ;;  %1487 = vmatmul.mubr.bf16.gmra.mrb[64].mxu0 %v1182_v49  ;;  %v1158_v53 = vmul.f32 %v1101_v52, %v3453_v43 }
 0x26d   : > { %v1105_v10 = vpop.f32.mrb[30].mxu1  ;;  %v1159_v57 = vmul.f32 %v1103_v55, %v3453_v43 }
 0x26e   : > { %v1160_v19 = vmul.f32 %v1105_v10, %v3455_v44  ;;  %v1107_v56 = vpop.f32.mrb[31].mxu1 }
 0x26f   : > { %v1161_v58 = vmul.f32 %v1107_v56, %v3455_v44 }
 0x270   : > { %v1184_v59 = vpack.c.bf16 %v1160_v19, %v1158_v53 }
 0x271   : > { %v1185_v18 = vpack.c.bf16 %v1161_v58, %v1159_v57 }
 0x273   : > { %v1111_v60 = vpop.f32.mrb[32].mxu1  ;;  %1496 = vmatprep.mubr.bf16.mxu0 %v1185_v18  ;;  %v3679_v18 = vpop.permute.xlu0 %1569 }
 0x274   : > { %v1113_v20 = vpop.f32.mrb[33].mxu1  ;;  %1497 = vmatmul.mubr.bf16.gmra.mrb[68].mxu0 %v1184_v59  ;;  %v1162_v62 = vmul.f32 %v1111_v60, %v3477_v8  ;;  %v3681_v60 = vpop.permute.xlu1 %1574 }
 0x275   : > { %v1115_v61 = vpop.f32.mrb[34].mxu1  ;;  %v1163_v35 = vmul.f32 %v1113_v20, %v3477_v8 }
 0x276   : > { %v1164_v23 = vmul.f32 %v1115_v61, %v3479_v12  ;;  %v1117_v63 = vpop.f32.mrb[35].mxu1 }
 0x277   : > { %v1165_v0 = vmul.f32 %v1117_v63, %v3479_v12  ;;  %v2786_v12 = vld [vmem:[%s4280_s5 + $0x4] ss:$8 sps:$4 sm:$0xff]  }
 0x278   : > { %v1186_v1 = vpack.c.bf16 %v1164_v23, %v1162_v62  ;;  %2610 = vmatprep.mubr.msk.bf16.mxu1 %vm966_vm0, %v2786_v12 }
 0x279   : > { %v1187_v43 = vpack.c.bf16 %v1165_v0, %v1163_v35 }
 0x27b   : > { %v1121_v5 = vpop.f32.mrb[36].mxu1  ;;  %1506 = vmatprep.mubr.bf16.mxu0 %v1187_v43 }
 0x27c   : > { %v1123_v44 = vpop.f32.mrb[37].mxu1  ;;  %1507 = vmatmul.mubr.bf16.gmra.mrb[72].mxu0 %v1186_v1  ;;  %v1166_v14 = vmul.f32 %v1121_v5, %v3501_v38 }
 0x27d   : > { %v1125_v13 = vpop.f32.mrb[38].mxu1  ;;  %v1167_v50 = vmul.f32 %v1123_v44, %v3501_v38  ;;  %v3650_v38 = vrot.slane %v1222_v21, %v419_v2 }
 0x27e   : > { %v1168_v15 = vmul.f32 %v1125_v13, %v3503_v39  ;;  %v1127_v16 = vpop.f32.mrb[39].mxu1 }
 0x27f   : > { %v1169_v17 = vmul.f32 %v1127_v16, %v3503_v39  ;;  %v3691_v16 = vpop.permute.xlu0 %1579 }
 0x280   : > { %v1188_v51 = vpack.c.bf16 %v1168_v15, %v1166_v14 }
 0x281   : > { %v1189_v8 = vpack.c.bf16 %v1169_v17, %v1167_v50  ;;  %v3693_v50 = vpop.permute.xlu1 %1584 }
 0x283   : > { %1516 = vmatprep.mubr.bf16.mxu0 %v1189_v8 }
 0x284   : > { %1517 = vmatmul.mubr.bf16.gmra.mrb[76].mxu0 %v1188_v51 }
 0x30f   : > { %v1428_v39 = vpop.f32.mrb[40].mxu0 }
 0x310   : > { %v1429_v24 = vadd.f32 %v1428_v39, %v3646_v22  ;;  %v1430_v25 = vpop.f32.mrb[41].mxu0 }
 0x311   : > { %v1431_v26 = vadd.f32 %v1430_v25, %v3650_v38  ;;  %v1432_v27 = vpop.f32.mrb[42].mxu0 }
 0x312   : > { %v1433_v28 = vadd.f32 %v1432_v27, %v3646_v22  ;;  %v1434_v3 = vpop.f32.mrb[43].mxu0  ;;  %v1647_v6 = vmul.f32 %v3655_v29, %v1429_v24 }
 0x313   : > { %v1435_v7 = vadd.f32 %v1434_v3, %v3650_v38  ;;  %v1648_v30 = vmul.f32 %v3655_v29, %v1431_v26 }
 0x314   : > { %v1649_v2 = vmul.f32 %v3657_v4, %v1433_v28 }
 0x315   : > { %v1650_v33 = vmul.f32 %v3657_v4, %v1435_v7 }
 0x316   : > { %v1687_v34 = vpack.c.bf16 %v1649_v2, %v1647_v6  ;;  %v3703_v2 = vpop.permute.xlu0 %1589 }
 0x317   : > { %v1438_v36 = vpop.f32.mrb[44].mxu0  ;;  %v1688_v37 = vpack.c.bf16 %v1650_v33, %v1648_v30  ;;  %v3705_v30 = vpop.permute.xlu1 %1594 }
 0x318   : > { %v1439_v40 = vadd.f32 %v1438_v36, %v3646_v22  ;;  %v1440_v41 = vpop.f32.mrb[45].mxu0 }
 0x319   : > { %v1441_v31 = vadd.f32 %v1440_v41, %v3650_v38  ;;  %v1442_v42 = vpop.f32.mrb[46].mxu0  ;;  %1827 = vmatprep.subr.bf16.mxu1 %v1688_v37 }
 0x31a   : > { %v1443_v32 = vadd.f32 %v1442_v42, %v3646_v22  ;;  %v1444_v45 = vpop.f32.mrb[47].mxu0  ;;  %1828 = vmatpush1.bf16.msra.mxu1 %v1687_v34  ;;  %v1651_v48 = vmul.f32 %v3667_v46, %v1439_v40 }
 0x31b   : > { %v1445_v47 = vadd.f32 %v1444_v45, %v3650_v38  ;;  %v1652_v49 = vmul.f32 %v3667_v46, %v1441_v31 }
 0x31c   : > { %v1653_v11 = vmul.f32 %v3669_v9, %v1443_v32 }
 0x31d   : > { %v1654_v54 = vmul.f32 %v3669_v9, %v1445_v47 }
 0x31e   : > { %v1689_v52 = vpack.c.bf16 %v1653_v11, %v1651_v48 }
 0x31f   : > { %v1448_v55 = vpop.f32.mrb[48].mxu0  ;;  %v1690_v10 = vpack.c.bf16 %v1654_v54, %v1652_v49  ;;  %v3715_v54 = vpop.permute.xlu0 %1599 }
 0x320   : > { %v1449_v53 = vadd.f32 %v1448_v55, %v3646_v22  ;;  %v1450_v19 = vpop.f32.mrb[49].mxu0 }
 0x321   : > { %v1451_v56 = vadd.f32 %v1450_v19, %v3650_v38  ;;  %v1452_v57 = vpop.f32.mrb[50].mxu0  ;;  %1829 = vmatprep.subr.bf16.mxu1 %v1690_v10 }
 0x322   : > { %v1453_v58 = vadd.f32 %v1452_v57, %v3646_v22  ;;  %v1454_v59 = vpop.f32.mrb[51].mxu0  ;;  %1830 = vmatpush1.bf16.msra.mxu1 %v1689_v52  ;;  %v1655_v61 = vmul.f32 %v3679_v18, %v1449_v53  ;;  %v3717_v52 = vpop.permute.xlu1 %1604 }
 0x323   : > { %v1455_v20 = vadd.f32 %v1454_v59, %v3650_v38  ;;  %v1656_v23 = vmul.f32 %v3679_v18, %v1451_v56 }
 0x324   : > { %v1657_v62 = vmul.f32 %v3681_v60, %v1453_v58 }
 0x325   : > { %v1658_v63 = vmul.f32 %v3681_v60, %v1455_v20 }
 0x326   : > { %v1691_v35 = vpack.c.bf16 %v1657_v62, %v1655_v61 }
 0x327   : > { %v1458_v0 = vpop.f32.mrb[52].mxu0  ;;  %v1692_v1 = vpack.c.bf16 %v1658_v63, %v1656_v23 }
 0x328   : > { %v1459_v43 = vadd.f32 %v1458_v0, %v3646_v22  ;;  %v1460_v5 = vpop.f32.mrb[53].mxu0  ;;  %v3727_v0 = vpop.permute.xlu0 %1609 }
 0x329   : > { %v1461_v44 = vadd.f32 %v1460_v5, %v3650_v38  ;;  %v1462_v13 = vpop.f32.mrb[54].mxu0  ;;  %1831 = vmatprep.subr.bf16.mxu1 %v1692_v1  ;;  %v3729_v1 = vpop.permute.xlu1 %1614 }
 0x32a   : > { %v1463_v14 = vadd.f32 %v1462_v13, %v3646_v22  ;;  %v1464_v15 = vpop.f32.mrb[55].mxu0  ;;  %1832 = vmatpush1.bf16.msra.mxu1 %v1691_v35  ;;  %v1659_v51 = vmul.f32 %v3691_v16, %v1459_v43 }
 0x32b   : > { %v1465_v17 = vadd.f32 %v1464_v15, %v3650_v38  ;;  %v1660_v12 = vmul.f32 %v3691_v16, %v1461_v44 }
 0x32c   : > { %v1661_v8 = vmul.f32 %v3693_v50, %v1463_v14 }
 0x32d   : > { %v1662_v21 = vmul.f32 %v3693_v50, %v1465_v17 }
 0x32e   : > { %v1693_v39 = vpack.c.bf16 %v1661_v8, %v1659_v51 }
 0x32f   : > { %v1468_v24 = vpop.f32.mrb[56].mxu0  ;;  %v1694_v25 = vpack.c.bf16 %v1662_v21, %v1660_v12 }
 0x330   : > { %v1469_v26 = vadd.f32 %v1468_v24, %v3646_v22  ;;  %v1470_v27 = vpop.f32.mrb[57].mxu0 }
 0x331   : > { %v1471_v28 = vadd.f32 %v1470_v27, %v3650_v38  ;;  %v1472_v3 = vpop.f32.mrb[58].mxu0  ;;  %1833 = vmatprep.subr.bf16.mxu1 %v1694_v25  ;;  %v3741_v27 = vpop.permute.xlu1 %1624 }
 0x332   : > { %v1473_v7 = vadd.f32 %v1472_v3, %v3646_v22  ;;  %v1474_v6 = vpop.f32.mrb[59].mxu0  ;;  %1834 = vmatpush1.bf16.msra.mxu1 %v1693_v39  ;;  %v1663_v34 = vmul.f32 %v3703_v2, %v1469_v26  ;;  %v3739_v26 = vpop.permute.xlu0 %1619 }
 0x333   : > { %v1475_v33 = vadd.f32 %v1474_v6, %v3650_v38  ;;  %v1664_v37 = vmul.f32 %v3703_v2, %v1471_v28 }
 0x334   : > { %v1665_v36 = vmul.f32 %v3705_v30, %v1473_v7 }
 0x335   : > { %v1666_v40 = vmul.f32 %v3705_v30, %v1475_v33 }
 0x336   : > { %v1695_v41 = vpack.c.bf16 %v1665_v36, %v1663_v34 }
 0x337   : > { %v1478_v31 = vpop.f32.mrb[60].mxu0  ;;  %v1696_v42 = vpack.c.bf16 %v1666_v40, %v1664_v37 }
 0x338   : > { %v1479_v32 = vadd.f32 %v1478_v31, %v3646_v22  ;;  %v1480_v45 = vpop.f32.mrb[61].mxu0 }
 0x339   : > { %v1481_v47 = vadd.f32 %v1480_v45, %v3650_v38  ;;  %v1482_v48 = vpop.f32.mrb[62].mxu0  ;;  %1835 = vmatprep.subr.bf16.mxu1 %v1696_v42 }
 0x33a   : > { %v1483_v11 = vadd.f32 %v1482_v48, %v3646_v22  ;;  %v1484_v49 = vpop.f32.mrb[63].mxu0  ;;  %1836 = vmatpush1.bf16.msra.mxu1 %v1695_v41  ;;  %v1667_v10 = vmul.f32 %v3715_v54, %v1479_v32  ;;  %v3753_v48 = vpop.permute.xlu1 %1634 }
 0x33b   : > { %v1485_v55 = vadd.f32 %v1484_v49, %v3650_v38  ;;  %v1668_v19 = vmul.f32 %v3715_v54, %v1481_v47  ;;  %v3751_v47 = vpop.permute.xlu0 %1629 }
 0x33c   : > { %v1669_v53 = vmul.f32 %v3717_v52, %v1483_v11 }
 0x33d   : > { %v1670_v56 = vmul.f32 %v3717_v52, %v1485_v55 }
 0x33e   : > { %v1697_v57 = vpack.c.bf16 %v1669_v53, %v1667_v10 }
 0x33f   : > { %v1488_v58 = vpop.f32.mrb[64].mxu0  ;;  %v1698_v59 = vpack.c.bf16 %v1670_v56, %v1668_v19 }
 0x340   : > { %v1489_v20 = vadd.f32 %v1488_v58, %v3646_v22  ;;  %v1490_v61 = vpop.f32.mrb[65].mxu0 }
 0x341   : > { %v1491_v62 = vadd.f32 %v1490_v61, %v3650_v38  ;;  %v1492_v23 = vpop.f32.mrb[66].mxu0  ;;  %1837 = vmatprep.subr.bf16.mxu1 %v1698_v59 }
 0x342   : > { %v1493_v63 = vadd.f32 %v1492_v23, %v3646_v22  ;;  %v1494_v35 = vpop.f32.mrb[67].mxu0  ;;  %1838 = vmatpush1.bf16.msra.mxu1 %v1697_v57  ;;  %v1671_v5 = vmul.f32 %v3727_v0, %v1489_v20 }
 0x343   : > { %v1495_v43 = vadd.f32 %v1494_v35, %v3650_v38  ;;  %v1672_v13 = vmul.f32 %v3727_v0, %v1491_v62  ;;  %v3765_v35 = vpop.permute.xlu1 %1644 }
 0x344   : > { %v1673_v44 = vmul.f32 %v3729_v1, %v1493_v63  ;;  %v3763_v63 = vpop.permute.xlu0 %1639 }
 0x345   : > { %v1674_v14 = vmul.f32 %v3729_v1, %v1495_v43 }
 0x346   : > { %v1699_v15 = vpack.c.bf16 %v1673_v44, %v1671_v5 }
 0x347   : > { %v1498_v17 = vpop.f32.mrb[68].mxu0  ;;  %v1700_v51 = vpack.c.bf16 %v1674_v14, %v1672_v13 }
 0x348   : > { %v1499_v8 = vadd.f32 %v1498_v17, %v3646_v22  ;;  %v1500_v12 = vpop.f32.mrb[69].mxu0 }
 0x349   : > { %v1501_v21 = vadd.f32 %v1500_v12, %v3650_v38  ;;  %v1502_v39 = vpop.f32.mrb[70].mxu0  ;;  %1839 = vmatprep.subr.bf16.mxu1 %v1700_v51  ;;  %v2789_v51 = vld [vmem:[%s4280_s5 + $0x10] ss:$8 sps:$4 sm:$0xff]   ;;  %v2792_v12 = vld [vmem:[%s4280_s5 + $0x20] ss:$8 sps:$4 sm:$0xff]  }
 0x34a   : > { %v1503_v24 = vadd.f32 %v1502_v39, %v3646_v22  ;;  %v1504_v25 = vpop.f32.mrb[71].mxu0  ;;  %1840 = vmatpush1.bf16.msra.mxu1 %v1699_v15  ;;  %v1675_v3 = vmul.f32 %v3739_v26, %v1499_v8  ;;  %v2790_v8 = vld [vmem:[%s4280_s5 + $0x24] ss:$8 sps:$4 sm:$0xff]   ;;  %v2795_v39 = vld [vmem:[%s4280_s5 + $0x30] ss:$8 sps:$4 sm:$0xff]  }
 0x34b   : > { %v1505_v28 = vadd.f32 %v1504_v25, %v3650_v38  ;;  %v1676_v6 = vmul.f32 %v3739_v26, %v1501_v21  ;;  %v2793_v21 = vld [vmem:[%s4280_s5 + $0x34] ss:$8 sps:$4 sm:$0xff]   ;;  %v2798_v25 = vld [vmem:[%s4280_s5 + $0x40] ss:$8 sps:$4 sm:$0xff]  }
 0x34c   : > { %v1677_v7 = vmul.f32 %v3741_v27, %v1503_v24  ;;  %v2796_v24 = vld [vmem:[%s4280_s5 + $0x44] ss:$8 sps:$4 sm:$0xff]  }
 0x34d   : > { %v1678_v33 = vmul.f32 %v3741_v27, %v1505_v28  ;;  %v2799_v28 = vld [vmem:[%s4280_s5 + $0x54] ss:$8 sps:$4 sm:$0xff]  }
 0x34e   : > { %v1701_v34 = vpack.c.bf16 %v1677_v7, %v1675_v3  ;;  %v2801_v3 = vld [vmem:[%s4280_s5 + $0x50] ss:$8 sps:$4 sm:$0xff]   ;;  %v2802_v7 = vld [vmem:[%s4280_s5 + $0x64] ss:$8 sps:$4 sm:$0xff]  }
 0x34f   : > { %v1508_v36 = vpop.f32.mrb[72].mxu0  ;;  %v1702_v37 = vpack.c.bf16 %v1678_v33, %v1676_v6  ;;  %v2804_v6 = vld [vmem:[%s4280_s5 + $0x60] ss:$8 sps:$4 sm:$0xff]   ;;  %v2805_v33 = vld [vmem:[%s4280_s5 + $0x74] ss:$8 sps:$4 sm:$0xff]  }
 0x350   : > { %v1509_v40 = vadd.f32 %v1508_v36, %v3646_v22  ;;  %v1510_v41 = vpop.f32.mrb[73].mxu0  ;;  %v2808_v36 = vld [vmem:[%s4280_s5 + $0x84] ss:$8 sps:$4 sm:$0xff]  }
 0x351   : > { %v1511_v31 = vadd.f32 %v1510_v41, %v3650_v38  ;;  %v1512_v42 = vpop.f32.mrb[74].mxu0  ;;  %1841 = vmatprep.subr.bf16.mxu1 %v1702_v37  ;;  %v2810_v37 = vld [vmem:[%s4280_s5 + $0x80] ss:$8 sps:$4 sm:$0xff]   ;;  %v2813_v41 = vld [vmem:[%s4280_s5 + $0x90] ss:$8 sps:$4 sm:$0xff]  }
 0x352   : > { %v1513_v32 = vadd.f32 %v1512_v42, %v3646_v22  ;;  %v1514_v45 = vpop.f32.mrb[75].mxu0  ;;  %1842 = vmatpush1.bf16.msra.mxu1 %v1701_v34  ;;  %v1679_v49 = vmul.f32 %v3751_v47, %v1509_v40  ;;  %v2807_v34 = vld [vmem:[%s4280_s5 + $0x70] ss:$8 sps:$4 sm:$0xff]   ;;  %v2811_v40 = vld [vmem:[%s4280_s5 + $0x94] ss:$8 sps:$4 sm:$0xff]  }
 0x353   : > { %v1515_v11 = vadd.f32 %v1514_v45, %v3650_v38  ;;  %v1680_v10 = vmul.f32 %v3751_v47, %v1511_v31 }
 0x354   : > { %v1681_v55 = vmul.f32 %v3753_v48, %v1513_v32 }
 0x355   : > { %v1682_v53 = vmul.f32 %v3753_v48, %v1515_v11 }
 0x356   : > { %v1703_v19 = vpack.c.bf16 %v1681_v55, %v1679_v49 }
 0x357   : > { %v1518_v56 = vpop.f32.mrb[76].mxu0  ;;  %v1704_v57 = vpack.c.bf16 %v1682_v53, %v1680_v10 }
 0x358   : > { %v1519_v58 = vadd.f32 %v1518_v56, %v3646_v22  ;;  %v1520_v59 = vpop.f32.mrb[77].mxu0 }
 0x359   : > { %v1521_v20 = vadd.f32 %v1520_v59, %v3650_v38  ;;  %v1522_v61 = vpop.f32.mrb[78].mxu0  ;;  %1843 = vmatprep.subr.bf16.mxu1 %v1704_v57 }
 0x35a   : > { %v1523_v62 = vadd.f32 %v1522_v61, %v3646_v22  ;;  %v1524_v23 = vpop.f32.mrb[79].mxu0  ;;  %1844 = vmatpush1.bf16.msra.mxu1 %v1703_v19  ;;  %v1683_v5 = vmul.f32 %v3763_v63, %v1519_v58  ;;  %v2784_v22 = vld [vmem:[%s4280_s5] ss:$8 sps:$4 sm:$0xff]  }
 0x35b   : > { %v1525_v43 = vadd.f32 %v1524_v23, %v3650_v38  ;;  %v1684_v13 = vmul.f32 %v3763_v63, %v1521_v20  ;;  %v2787_v38 = vld [vmem:[%s4280_s5 + $0x14] ss:$8 sps:$4 sm:$0xff]  }
 0x35c   : > { %v1685_v44 = vmul.f32 %v3765_v35, %v1523_v62 }
 0x35d   : > { %v1686_v14 = vmul.f32 %v3765_v35, %v1525_v43 }
 0x35e   : > { %v1705_v15 = vpack.c.bf16 %v1685_v44, %v1683_v5 }
 0x35f   : > { %v1706_v17 = vpack.c.bf16 %v1686_v14, %v1684_v13 }
 0x361   : > { %1845 = vmatprep.subr.bf16.mxu1 %v1706_v17 }
 0x362   : > { %1846 = vmatpush1.bf16.msra.mxu1 %v1705_v15 }
 0x365   : > { %1860 = vmatmul.mubr.bf16.vlgmr.msra.gmra.mrb[40].mxu1 %v2784_v22 }
 0x366   : > { %2611 = vmatprep.mubr.msk.bf16.mxu1 %vm966_vm0, %v2787_v38 }
 0x36d   : > { %1870 = vmatmul.mubr.bf16.gmra.mrb[44].mxu1 %v2789_v51 }
 0x36e   : > { %2612 = vmatprep.mubr.msk.bf16.mxu1 %vm966_vm0, %v2790_v8 }
 0x375   : > { %1880 = vmatmul.mubr.bf16.gmra.mrb[48].mxu1 %v2792_v12 }
 0x376   : > { %2613 = vmatprep.mubr.msk.bf16.mxu1 %vm966_vm0, %v2793_v21 }
 0x37d   : > { %1890 = vmatmul.mubr.bf16.gmra.mrb[52].mxu1 %v2795_v39 }
 0x37e   : > { %2614 = vmatprep.mubr.msk.bf16.mxu1 %vm966_vm0, %v2796_v24 }
 0x385   : > { %1900 = vmatmul.mubr.bf16.gmra.mrb[56].mxu1 %v2798_v25 }
 0x386   : > { %2615 = vmatprep.mubr.msk.bf16.mxu1 %vm966_vm0, %v2799_v28 }
 0x38d   : > { %1910 = vmatmul.mubr.bf16.gmra.mrb[60].mxu1 %v2801_v3 }
 0x38e   : > { %2616 = vmatprep.mubr.msk.bf16.mxu1 %vm966_vm0, %v2802_v7 }
 0x395   : > { %1920 = vmatmul.mubr.bf16.gmra.mrb[64].mxu1 %v2804_v6 }
 0x396   : > { %2617 = vmatprep.mubr.msk.bf16.mxu1 %vm966_vm0, %v2805_v33 }
 0x39d   : > { %1930 = vmatmul.mubr.bf16.gmra.mrb[68].mxu1 %v2807_v34 }
 0x39e   : > { %2618 = vmatprep.mubr.msk.bf16.mxu1 %vm966_vm0, %v2808_v36 }
 0x3a5   : > { %1940 = vmatmul.mubr.bf16.gmra.mrb[72].mxu1 %v2810_v37 }
 0x3a6   : > { %2619 = vmatprep.mubr.msk.bf16.mxu1 %vm966_vm0, %v2811_v40 }
 0x3ad   : > { %1950 = vmatmul.mubr.bf16.gmra.mrb[76].mxu1 %v2813_v41 }
 0x438   : > { %v1861_v31 = vpop.f32.mrb[40].mxu1 }
 0x439   : > { %v1960_v42 = vmul.f32 %v1861_v31, %v3655_v29  ;;  %v1863_v32 = vpop.f32.mrb[41].mxu1 }
 0x43a   : > { %v1961_v45 = vmul.f32 %v1863_v32, %v3655_v29  ;;  %v1865_v11 = vpop.f32.mrb[42].mxu1 }
 0x43b   : > { %v3840_v49 = vmax.f32 %v1960_v42, 0.0  ;;  %v1962_v55 = vmul.f32 %v1865_v11, %v3657_v4  ;;  %v1867_v10 = vpop.f32.mrb[43].mxu1 }
 0x43c   : > { %v3843_v53 = vmax.f32 %v1961_v45, 0.0  ;;  %v1963_v19 = vmul.f32 %v1867_v10, %v3657_v4 }
 0x43d   : > { %v3846_v56 = vmax.f32 %v1962_v55, 0.0 }
 0x43e   : > { %v3848_v57 = vmax.f32 %v1963_v19, 0.0  ;;  %v2040_v58 = vmax.f32 %v3840_v49, %v3843_v53 }
 0x440   : > { %2041 = vmax.xlane.f32.xlu0 %v2040_v58  ;;  %v1871_v59 = vpop.f32.mrb[44].mxu1  ;;  %v2043_v29 = vmax.f32 %v3846_v56, %v3848_v57 }
 0x441   : > { %v1964_v20 = vmul.f32 %v1871_v59, %v3667_v46  ;;  %v1873_v61 = vpop.f32.mrb[45].mxu1 }
 0x442   : > { %v1965_v62 = vmul.f32 %v1873_v61, %v3667_v46  ;;  %2044 = vmax.xlane.f32.xlu1 %v2043_v29  ;;  %v1875_v23 = vpop.f32.mrb[46].mxu1 }
 0x443   : > { %v3856_v4 = vmax.f32 %v1964_v20, 0.0  ;;  %v1966_v43 = vmul.f32 %v1875_v23, %v3669_v9  ;;  %v1877_v5 = vpop.f32.mrb[47].mxu1 }
 0x444   : > { %v3859_v44 = vmax.f32 %v1965_v62, 0.0  ;;  %v1967_v13 = vmul.f32 %v1877_v5, %v3669_v9 }
 0x445   : > { %v3862_v14 = vmax.f32 %v1966_v43, 0.0 }
 0x446   : > { %v3864_v15 = vmax.f32 %v1967_v13, 0.0  ;;  %v2046_v17 = vmax.f32 %v3856_v4, %v3859_v44 }
 0x448   : > { %2047 = vmax.xlane.f32.xlu0 %v2046_v17  ;;  %v1881_v46 = vpop.f32.mrb[48].mxu1  ;;  %v2049_v12 = vmax.f32 %v3862_v14, %v3864_v15 }
 0x449   : > { %v1968_v22 = vmul.f32 %v1881_v46, %v3679_v18  ;;  %v1883_v38 = vpop.f32.mrb[49].mxu1 }
 0x44a   : > { %v1969_v51 = vmul.f32 %v1883_v38, %v3679_v18  ;;  %v1885_v8 = vpop.f32.mrb[50].mxu1 }
 0x44b   : > { %v3872_v21 = vmax.f32 %v1968_v22, 0.0  ;;  %v1970_v9 = vmul.f32 %v1885_v8, %v3681_v60  ;;  %v1887_v39 = vpop.f32.mrb[51].mxu1 }
 0x44c   : > { %v3875_v24 = vmax.f32 %v1969_v51, 0.0  ;;  %v1971_v25 = vmul.f32 %v1887_v39, %v3681_v60  ;;  %2050 = vmax.xlane.f32.xlu0 %v2049_v12 }
 0x44d   : > { %v3878_v28 = vmax.f32 %v1970_v9, 0.0 }
 0x44e   : > { %v3880_v3 = vmax.f32 %v1971_v25, 0.0  ;;  %v2052_v18 = vmax.f32 %v3872_v21, %v3875_v24 }
 0x450   : > { %2053 = vmax.xlane.f32.xlu1 %v2052_v18  ;;  %v1891_v7 = vpop.f32.mrb[52].mxu1  ;;  %v2055_v6 = vmax.f32 %v3878_v28, %v3880_v3 }
 0x451   : > { %v1972_v33 = vmul.f32 %v1891_v7, %v3691_v16  ;;  %v1893_v34 = vpop.f32.mrb[53].mxu1 }
 0x452   : > { %v1973_v36 = vmul.f32 %v1893_v34, %v3691_v16  ;;  %2056 = vmax.xlane.f32.xlu0 %v2055_v6  ;;  %v1895_v60 = vpop.f32.mrb[54].mxu1 }
 0x453   : > { %v3888_v37 = vmax.f32 %v1972_v33, 0.0  ;;  %v1974_v40 = vmul.f32 %v1895_v60, %v3693_v50  ;;  %v1897_v41 = vpop.f32.mrb[55].mxu1 }
 0x454   : > { %v3891_v31 = vmax.f32 %v1973_v36, 0.0  ;;  %v1975_v42 = vmul.f32 %v1897_v41, %v3693_v50 }
 0x455   : > { %v3894_v32 = vmax.f32 %v1974_v40, 0.0 }
 0x456   : > { %v3896_v45 = vmax.f32 %v1975_v42, 0.0  ;;  %v2058_v11 = vmax.f32 %v3888_v37, %v3891_v31 }
 0x458   : > { %2059 = vmax.xlane.f32.xlu1 %v2058_v11  ;;  %v1901_v16 = vpop.f32.mrb[56].mxu1  ;;  %v2061_v55 = vmax.f32 %v3894_v32, %v3896_v45 }
 0x459   : > { %v1976_v10 = vmul.f32 %v1901_v16, %v3703_v2  ;;  %v1903_v19 = vpop.f32.mrb[57].mxu1 }
 0x45a   : > { %v1977_v58 = vmul.f32 %v1903_v19, %v3703_v2  ;;  %2062 = vmax.xlane.f32.xlu0 %v2061_v55  ;;  %v1905_v59 = vpop.f32.mrb[58].mxu1 }
 0x45b   : > { %v3904_v50 = vmax.f32 %v1976_v10, 0.0  ;;  %v1978_v29 = vmul.f32 %v1905_v59, %v3705_v30  ;;  %v1907_v20 = vpop.f32.mrb[59].mxu1 }
 0x45c   : > { %v3907_v61 = vmax.f32 %v1977_v58, 0.0  ;;  %v1979_v62 = vmul.f32 %v1907_v20, %v3705_v30 }
 0x45d   : > { %v3910_v23 = vmax.f32 %v1978_v29, 0.0 }
 0x45e   : > { %4300 = vst [vmem:[#allocation5_spill] sm:$0xff] %v3907_v61  ;;  %v3912_v43 = vmax.f32 %v1979_v62, 0.0  ;;  %v2064_v5 = vmax.f32 %v3904_v50, %v3907_v61 }
 0x460   : > { %4301 = vst [vmem:[#allocation6_spill] sm:$0xff] %v3912_v43  ;;  %2065 = vmax.xlane.f32.xlu1 %v2064_v5  ;;  %v1911_v2 = vpop.f32.mrb[60].mxu1  ;;  %v2067_v13 = vmax.f32 %v3910_v23, %v3912_v43 }
 0x461   : > { %v1980_v17 = vmul.f32 %v1911_v2, %v3715_v54  ;;  %v1913_v46 = vpop.f32.mrb[61].mxu1 }
 0x462   : > { %v1981_v22 = vmul.f32 %v1913_v46, %v3715_v54  ;;  %2068 = vmax.xlane.f32.xlu0 %v2067_v13  ;;  %v1915_v38 = vpop.f32.mrb[62].mxu1 }
 0x463   : > { %v3920_v30 = vmax.f32 %v1980_v17, 0.0  ;;  %v1982_v51 = vmul.f32 %v1915_v38, %v3717_v52  ;;  %v1917_v8 = vpop.f32.mrb[63].mxu1 }
 0x464   : > { %v3923_v12 = vmax.f32 %v1981_v22, 0.0  ;;  %v1983_v9 = vmul.f32 %v1917_v8, %v3717_v52 }
 0x465   : > { %v3926_v39 = vmax.f32 %v1982_v51, 0.0 }
 0x466   : > { %4302 = vst [vmem:[#allocation7_spill] sm:$0xff] %v3923_v12  ;;  %v3928_v25 = vmax.f32 %v1983_v9, 0.0  ;;  %v2070_v18 = vmax.f32 %v3920_v30, %v3923_v12 }
 0x468   : > { %4303 = vst [vmem:[#allocation8_spill] sm:$0xff] %v3928_v25  ;;  %2071 = vmax.xlane.f32.xlu1 %v2070_v18  ;;  %v1921_v54 = vpop.f32.mrb[64].mxu1  ;;  %v2073_v7 = vmax.f32 %v3926_v39, %v3928_v25 }
 0x469   : > { %v1984_v6 = vmul.f32 %v1921_v54, %v3727_v0  ;;  %v1923_v33 = vpop.f32.mrb[65].mxu1 }
 0x46a   : > { %v1985_v34 = vmul.f32 %v1923_v33, %v3727_v0  ;;  %2074 = vmax.xlane.f32.xlu0 %v2073_v7  ;;  %v1925_v36 = vpop.f32.mrb[66].mxu1 }
 0x46b   : > { %v3936_v52 = vmax.f32 %v1984_v6, 0.0  ;;  %v1986_v60 = vmul.f32 %v1925_v36, %v3729_v1  ;;  %v1927_v40 = vpop.f32.mrb[67].mxu1 }
 0x46c   : > { %v3939_v41 = vmax.f32 %v1985_v34, 0.0  ;;  %v1987_v42 = vmul.f32 %v1927_v40, %v3729_v1 }
 0x46d   : > { %v3942_v11 = vmax.f32 %v1986_v60, 0.0 }
 0x46e   : > { %4304 = vst [vmem:[#allocation9_spill] sm:$0xff] %v3939_v41  ;;  %v3944_v16 = vmax.f32 %v1987_v42, 0.0  ;;  %v2076_v55 = vmax.f32 %v3936_v52, %v3939_v41 }
 0x470   : > { %4305 = vst [vmem:[#allocation10_spill] sm:$0xff] %v3944_v16  ;;  %2077 = vmax.xlane.f32.xlu1 %v2076_v55  ;;  %v1931_v0 = vpop.f32.mrb[68].mxu1  ;;  %v2079_v10 = vmax.f32 %v3942_v11, %v3944_v16 }
 0x471   : > { %v1988_v19 = vmul.f32 %v1931_v0, %v3739_v26  ;;  %v1933_v58 = vpop.f32.mrb[69].mxu1 }
 0x472   : > { %v1989_v59 = vmul.f32 %v1933_v58, %v3739_v26  ;;  %2080 = vmax.xlane.f32.xlu0 %v2079_v10  ;;  %v1935_v29 = vpop.f32.mrb[70].mxu1 }
 0x473   : > { %v3952_v1 = vmax.f32 %v1988_v19, 0.0  ;;  %v1990_v20 = vmul.f32 %v1935_v29, %v3741_v27  ;;  %v1937_v62 = vpop.f32.mrb[71].mxu1 }
 0x474   : > { %v3955_v5 = vmax.f32 %v1989_v59, 0.0  ;;  %v1991_v2 = vmul.f32 %v1937_v62, %v3741_v27 }
 0x475   : > { %v3958_v13 = vmax.f32 %v1990_v20, 0.0 }
 0x476   : > { %4306 = vst [vmem:[#allocation11_spill] sm:$0xff] %v3955_v5  ;;  %v3960_v17 = vmax.f32 %v1991_v2, 0.0  ;;  %v2082_v46 = vmax.f32 %v3952_v1, %v3955_v5 }
 0x478   : > { %4307 = vst [vmem:[#allocation12_spill] sm:$0xff] %v3960_v17  ;;  %2083 = vmax.xlane.f32.xlu1 %v2082_v46  ;;  %v1941_v26 = vpop.f32.mrb[72].mxu1  ;;  %v2085_v22 = vmax.f32 %v3958_v13, %v3960_v17 }
 0x479   : > { %v1992_v38 = vmul.f32 %v1941_v26, %v3751_v47  ;;  %v1943_v51 = vpop.f32.mrb[73].mxu1 }
 0x47a   : > { %v1993_v8 = vmul.f32 %v1943_v51, %v3751_v47  ;;  %2086 = vmax.xlane.f32.xlu0 %v2085_v22  ;;  %v1945_v9 = vpop.f32.mrb[74].mxu1 }
 0x47b   : > { %v3968_v27 = vmax.f32 %v1992_v38, 0.0  ;;  %v1994_v18 = vmul.f32 %v1945_v9, %v3753_v48  ;;  %v1947_v54 = vpop.f32.mrb[75].mxu1 }
 0x47c   : > { %v3971_v7 = vmax.f32 %v1993_v8, 0.0  ;;  %v1995_v6 = vmul.f32 %v1947_v54, %v3753_v48 }
 0x47d   : > { %v3974_v33 = vmax.f32 %v1994_v18, 0.0 }
 0x47e   : > { %4308 = vst [vmem:[#allocation13_spill] sm:$0xff] %v3971_v7  ;;  %v3976_v34 = vmax.f32 %v1995_v6, 0.0  ;;  %v2088_v36 = vmax.f32 %v3968_v27, %v3971_v7 }
 0x480   : > { %4309 = vst [vmem:[#allocation14_spill] sm:$0xff] %v3976_v34  ;;  %2089 = vmax.xlane.f32.xlu1 %v2088_v36  ;;  %v1951_v47 = vpop.f32.mrb[76].mxu1  ;;  %v2091_v60 = vmax.f32 %v3974_v33, %v3976_v34 }
 0x481   : > { %v1996_v40 = vmul.f32 %v1951_v47, %v3763_v63  ;;  %v1953_v42 = vpop.f32.mrb[77].mxu1 }
 0x482   : > { %v1997_v55 = vmul.f32 %v1953_v42, %v3763_v63  ;;  %2092 = vmax.xlane.f32.xlu0 %v2091_v60  ;;  %v1955_v0 = vpop.f32.mrb[78].mxu1 }
 0x483   : > { %v3984_v48 = vmax.f32 %v1996_v40, 0.0  ;;  %v1998_v10 = vmul.f32 %v1955_v0, %v3765_v35  ;;  %v1957_v19 = vpop.f32.mrb[79].mxu1 }
 0x484   : > { %v3987_v58 = vmax.f32 %v1997_v55, 0.0  ;;  %v1999_v59 = vmul.f32 %v1957_v19, %v3765_v35 }
 0x485   : > { %v3990_v29 = vmax.f32 %v1998_v10, 0.0 }
 0x486   : > { %4310 = vst [vmem:[#allocation15_spill] sm:$0xff] %v3987_v58  ;;  %v3992_v20 = vmax.f32 %v1999_v59, 0.0  ;;  %v2094_v62 = vmax.f32 %v3984_v48, %v3987_v58 }
 0x487   : > { %4311 = vst [vmem:[#allocation16_spill] sm:$0xff] %v3990_v29 }
 0x488   : > { %4312 = vst [vmem:[#allocation17_spill] sm:$0xff] %v3992_v20  ;;  %2095 = vmax.xlane.f32.xlu1 %v2094_v62  ;;  %v2097_v63 = vmax.f32 %v3990_v29, %v3992_v20 }
 0x48a   : > { %2098 = vmax.xlane.f32.xlu0 %v2097_v63 }
 0x4cd   : > { %v3998_v2 = vpop.xlane.xlu0 %2041 }
 0x4ce   : > { %v2100_v46 = vsub.f32 %v3840_v49, %v3998_v2  ;;  %v2101_v35 = vsub.f32 %v3843_v53, %v3998_v2 }
 0x4cf   : > { %v4004_v26 = vpop.xlane.xlu1 %2044 }
 0x4d0   : > { %v2140_v22 = vmul.f32 1.442695, %v2100_v46  ;;  %v2142_v38 = vmul.f32 1.442695, %v2101_v35  ;;  %v2102_v51 = vsub.f32 %v3846_v56, %v4004_v26  ;;  %v2103_v8 = vsub.f32 %v3848_v57, %v4004_v26 }
 0x4d2   : > { %2814 = vpow2.f32 %v2140_v22  ;;  %v2144_v9 = vmul.f32 1.442695, %v2102_v51  ;;  %v2146_v18 = vmul.f32 1.442695, %v2103_v8 }
 0x4d3   : > { %2816 = vpow2.f32 %v2142_v38 }
 0x4d4   : > { %2818 = vpow2.f32 %v2144_v9 }
 0x4d5   : > { %2820 = vpow2.f32 %v2146_v18  ;;  %v4010_v54 = vpop.xlane.xlu0 %2047 }
 0x4d6   : > { %v2104_v6 = vsub.f32 %v3856_v4, %v4010_v54  ;;  %v2105_v36 = vsub.f32 %v3859_v44, %v4010_v54 }
 0x4d8   : > { %v2148_v47 = vmul.f32 1.442695, %v2104_v6  ;;  %v2150_v60 = vmul.f32 1.442695, %v2105_v36 }
 0x4d9   : > { %v4016_v40 = vpop.xlane.xlu0 %2050 }
 0x4da   : > { %2822 = vpow2.f32 %v2148_v47  ;;  %v2106_v42 = vsub.f32 %v3862_v14, %v4016_v40  ;;  %v2107_v55 = vsub.f32 %v3864_v15, %v4016_v40 }
 0x4db   : > { %2824 = vpow2.f32 %v2150_v60 }
 0x4dc   : > { %v2815_v0 = vpop.eup %2814  ;;  %v2152_v10 = vmul.f32 1.442695, %v2106_v42  ;;  %v2154_v19 = vmul.f32 1.442695, %v2107_v55 }
 0x4dd   : > { %v2817_v59 = vpop.eup %2816  ;;  %v4022_v62 = vpop.xlane.xlu1 %2053 }
 0x4de   : > { %v2819_v63 = vpop.eup %2818  ;;  %2826 = vpow2.f32 %v2152_v10  ;;  %v2108_v46 = vsub.f32 %v3872_v21, %v4022_v62  ;;  %v2109_v35 = vsub.f32 %v3875_v24, %v4022_v62  ;;  %v2220_v22 = vadd.f32 %v2817_v59, %v2815_v0 }
 0x4df   : > { %v2821_v38 = vpop.eup %2820  ;;  %2828 = vpow2.f32 %v2154_v19  ;;  %v4028_v51 = vpop.xlane.xlu0 %2056 }
 0x4e0   : > { %v2156_v8 = vmul.f32 1.442695, %v2108_v46  ;;  %v2158_v9 = vmul.f32 1.442695, %v2109_v35  ;;  %v2110_v18 = vsub.f32 %v3878_v28, %v4028_v51  ;;  %v2111_v6 = vsub.f32 %v3880_v3, %v4028_v51  ;;  %2221 = vadd.xlane.f32.xlu1 %v2220_v22 }
 0x4e1   : > { %v2223_v36 = vadd.f32 %v2821_v38, %v2819_v63 }
 0x4e2   : > { %2830 = vpow2.f32 %v2156_v8  ;;  %v2160_v47 = vmul.f32 1.442695, %v2110_v18  ;;  %v2162_v60 = vmul.f32 1.442695, %v2111_v6 }
 0x4e3   : > { %2832 = vpow2.f32 %v2158_v9  ;;  %2224 = vadd.xlane.f32.xlu0 %v2223_v36 }
 0x4e4   : > { %v2823_v42 = vpop.eup %2822  ;;  %2834 = vpow2.f32 %v2160_v47 }
 0x4e5   : > { %v2825_v55 = vpop.eup %2824  ;;  %2836 = vpow2.f32 %v2162_v60  ;;  %v4034_v0 = vpop.xlane.xlu1 %2059 }
 0x4e6   : > { %v2112_v10 = vsub.f32 %v3888_v37, %v4034_v0  ;;  %v2113_v19 = vsub.f32 %v3891_v31, %v4034_v0  ;;  %v2226_v59 = vadd.f32 %v2825_v55, %v2823_v42 }
 0x4e7   : > { %v4040_v46 = vpop.xlane.xlu0 %2062 }
 0x4e8   : > { %v2827_v63 = vpop.eup %2826  ;;  %v2164_v35 = vmul.f32 1.442695, %v2112_v10  ;;  %v2166_v22 = vmul.f32 1.442695, %v2113_v19  ;;  %v2114_v38 = vsub.f32 %v3894_v32, %v4040_v46  ;;  %v2115_v8 = vsub.f32 %v3896_v45, %v4040_v46  ;;  %2227 = vadd.xlane.f32.xlu1 %v2226_v59 }
 0x4e9   : > { %v2829_v9 = vpop.eup %2828 }
 0x4ea   : > { %2838 = vpow2.f32 %v2164_v35  ;;  %v2168_v18 = vmul.f32 1.442695, %v2114_v38  ;;  %v2170_v6 = vmul.f32 1.442695, %v2115_v8  ;;  %v2229_v36 = vadd.f32 %v2829_v9, %v2827_v63 }
 0x4eb   : > { %2840 = vpow2.f32 %v2166_v22 }
 0x4ec   : > { %v2831_v47 = vpop.eup %2830  ;;  %2842 = vpow2.f32 %v2168_v18  ;;  %2230 = vadd.xlane.f32.xlu0 %v2229_v36 }
 0x4ed   : > { %v2833_v60 = vpop.eup %2832  ;;  %2844 = vpow2.f32 %v2170_v6  ;;  %v4046_v42 = vpop.xlane.xlu1 %2065 }
 0x4ee   : > { %v2835_v55 = vpop.eup %2834  ;;  %v2116_v10 = vsub.f32 %v3904_v50, %v4046_v42  ;;  %v2117_v19 = vsub.f32 %v3907_v61, %v4046_v42  ;;  %v2232_v59 = vadd.f32 %v2833_v60, %v2831_v47 }
 0x4ef   : > { %v2837_v35 = vpop.eup %2836  ;;  %v4052_v38 = vpop.xlane.xlu0 %2068 }
 0x4f0   : > { %v2172_v63 = vmul.f32 1.442695, %v2116_v10  ;;  %v2174_v22 = vmul.f32 1.442695, %v2117_v19  ;;  %v2118_v8 = vsub.f32 %v3910_v23, %v4052_v38  ;;  %v2119_v9 = vsub.f32 %v3912_v43, %v4052_v38  ;;  %2233 = vadd.xlane.f32.xlu1 %v2232_v59 }
 0x4f1   : > { %v2235_v18 = vadd.f32 %v2837_v35, %v2835_v55 }
 0x4f2   : > { %2846 = vpow2.f32 %v2172_v63  ;;  %v2176_v6 = vmul.f32 1.442695, %v2118_v8  ;;  %v2178_v36 = vmul.f32 1.442695, %v2119_v9 }
 0x4f3   : > { %2848 = vpow2.f32 %v2174_v22  ;;  %2236 = vadd.xlane.f32.xlu0 %v2235_v18 }
 0x4f4   : > { %v2839_v61 = vpop.eup %2838  ;;  %2850 = vpow2.f32 %v2176_v6 }
 0x4f5   : > { %v2841_v47 = vpop.eup %2840  ;;  %2852 = vpow2.f32 %v2178_v36  ;;  %v4058_v60 = vpop.xlane.xlu1 %2071 }
 0x4f6   : > { %v2843_v10 = vpop.eup %2842  ;;  %v2120_v19 = vsub.f32 %v3920_v30, %v4058_v60  ;;  %v2121_v43 = vsub.f32 %v3923_v12, %v4058_v60  ;;  %v2238_v59 = vadd.f32 %v2841_v47, %v2839_v61 }
 0x4f7   : > { %v2845_v55 = vpop.eup %2844  ;;  %v4064_v35 = vpop.xlane.xlu0 %2074 }
 0x4f8   : > { %v2180_v63 = vmul.f32 1.442695, %v2120_v19  ;;  %v2182_v22 = vmul.f32 1.442695, %v2121_v43  ;;  %v2122_v8 = vsub.f32 %v3926_v39, %v4064_v35  ;;  %v2123_v9 = vsub.f32 %v3928_v25, %v4064_v35  ;;  %2239 = vadd.xlane.f32.xlu1 %v2238_v59 }
 0x4f9   : > { %v2241_v18 = vadd.f32 %v2845_v55, %v2843_v10 }
 0x4fa   : > { %2854 = vpow2.f32 %v2180_v63  ;;  %v2184_v6 = vmul.f32 1.442695, %v2122_v8  ;;  %v2186_v36 = vmul.f32 1.442695, %v2123_v9 }
 0x4fb   : > { %2856 = vpow2.f32 %v2182_v22  ;;  %2242 = vadd.xlane.f32.xlu0 %v2241_v18 }
 0x4fc   : > { %v2847_v12 = vpop.eup %2846  ;;  %2858 = vpow2.f32 %v2184_v6 }
 0x4fd   : > { %v2849_v61 = vpop.eup %2848  ;;  %2860 = vpow2.f32 %v2186_v36  ;;  %v4070_v47 = vpop.xlane.xlu1 %2077 }
 0x4fe   : > { %v2851_v43 = vpop.eup %2850  ;;  %v2124_v19 = vsub.f32 %v3936_v52, %v4070_v47  ;;  %v2125_v25 = vsub.f32 %v3939_v41, %v4070_v47  ;;  %v2244_v59 = vadd.f32 %v2849_v61, %v2847_v12 }
 0x4ff   : > { %v2853_v10 = vpop.eup %2852  ;;  %v4076_v55 = vpop.xlane.xlu0 %2080 }
 0x500   : > { %v2188_v63 = vmul.f32 1.442695, %v2124_v19  ;;  %v2190_v22 = vmul.f32 1.442695, %v2125_v25  ;;  %v2126_v8 = vsub.f32 %v3942_v11, %v4076_v55  ;;  %v2127_v9 = vsub.f32 %v3944_v16, %v4076_v55  ;;  %2245 = vadd.xlane.f32.xlu1 %v2244_v59 }
 0x501   : > { %v2247_v18 = vadd.f32 %v2853_v10, %v2851_v43 }
 0x502   : > { %2862 = vpow2.f32 %v2188_v63  ;;  %v2192_v6 = vmul.f32 1.442695, %v2126_v8  ;;  %v2194_v36 = vmul.f32 1.442695, %v2127_v9 }
 0x503   : > { %2864 = vpow2.f32 %v2190_v22  ;;  %2248 = vadd.xlane.f32.xlu0 %v2247_v18 }
 0x504   : > { %v2855_v41 = vpop.eup %2854  ;;  %2866 = vpow2.f32 %v2192_v6 }
 0x505   : > { %v2857_v12 = vpop.eup %2856  ;;  %2868 = vpow2.f32 %v2194_v36  ;;  %v4082_v61 = vpop.xlane.xlu1 %2083 }
 0x506   : > { %v2859_v25 = vpop.eup %2858  ;;  %v2128_v19 = vsub.f32 %v3952_v1, %v4082_v61  ;;  %v2129_v16 = vsub.f32 %v3955_v5, %v4082_v61  ;;  %v2250_v59 = vadd.f32 %v2857_v12, %v2855_v41 }
 0x507   : > { %v2861_v43 = vpop.eup %2860  ;;  %v4088_v10 = vpop.xlane.xlu0 %2086 }
 0x508   : > { %v2196_v63 = vmul.f32 1.442695, %v2128_v19  ;;  %v2198_v22 = vmul.f32 1.442695, %v2129_v16  ;;  %v2130_v8 = vsub.f32 %v3958_v13, %v4088_v10  ;;  %v2131_v9 = vsub.f32 %v3960_v17, %v4088_v10  ;;  %2251 = vadd.xlane.f32.xlu1 %v2250_v59 }
 0x509   : > { %v2253_v18 = vadd.f32 %v2861_v43, %v2859_v25 }
 0x50a   : > { %2870 = vpow2.f32 %v2196_v63  ;;  %v2200_v6 = vmul.f32 1.442695, %v2130_v8  ;;  %v2202_v36 = vmul.f32 1.442695, %v2131_v9 }
 0x50b   : > { %2872 = vpow2.f32 %v2198_v22  ;;  %2254 = vadd.xlane.f32.xlu0 %v2253_v18 }
 0x50c   : > { %v2863_v5 = vpop.eup %2862  ;;  %2874 = vpow2.f32 %v2200_v6 }
 0x50d   : > { %v2865_v41 = vpop.eup %2864  ;;  %2876 = vpow2.f32 %v2202_v36  ;;  %v4094_v12 = vpop.xlane.xlu1 %2089 }
 0x50e   : > { %v2867_v16 = vpop.eup %2866  ;;  %v2132_v19 = vsub.f32 %v3968_v27, %v4094_v12  ;;  %v2133_v17 = vsub.f32 %v3971_v7, %v4094_v12  ;;  %v2256_v59 = vadd.f32 %v2865_v41, %v2863_v5 }
 0x50f   : > { %v2869_v25 = vpop.eup %2868  ;;  %v4100_v43 = vpop.xlane.xlu0 %2092 }
 0x510   : > { %v2204_v63 = vmul.f32 1.442695, %v2132_v19  ;;  %v2206_v22 = vmul.f32 1.442695, %v2133_v17  ;;  %v2134_v8 = vsub.f32 %v3974_v33, %v4100_v43  ;;  %v2135_v9 = vsub.f32 %v3976_v34, %v4100_v43  ;;  %2257 = vadd.xlane.f32.xlu1 %v2256_v59 }
 0x511   : > { %v2259_v18 = vadd.f32 %v2869_v25, %v2867_v16 }
 0x512   : > { %2878 = vpow2.f32 %v2204_v63  ;;  %v2208_v6 = vmul.f32 1.442695, %v2134_v8  ;;  %v2210_v36 = vmul.f32 1.442695, %v2135_v9 }
 0x513   : > { %2880 = vpow2.f32 %v2206_v22  ;;  %2260 = vadd.xlane.f32.xlu0 %v2259_v18 }
 0x514   : > { %v2871_v7 = vpop.eup %2870  ;;  %2882 = vpow2.f32 %v2208_v6 }
 0x515   : > { %v2873_v5 = vpop.eup %2872  ;;  %2884 = vpow2.f32 %v2210_v36  ;;  %v4106_v41 = vpop.xlane.xlu1 %2095 }
 0x516   : > { %v2875_v17 = vpop.eup %2874  ;;  %v2136_v19 = vsub.f32 %v3984_v48, %v4106_v41  ;;  %v2137_v34 = vsub.f32 %v3987_v58, %v4106_v41  ;;  %v2262_v59 = vadd.f32 %v2873_v5, %v2871_v7 }
 0x517   : > { %v2877_v16 = vpop.eup %2876  ;;  %v4112_v25 = vpop.xlane.xlu0 %2098 }
 0x518   : > { %v2212_v63 = vmul.f32 1.442695, %v2136_v19  ;;  %v2214_v22 = vmul.f32 1.442695, %v2137_v34  ;;  %2263 = vadd.xlane.f32.xlu1 %v2262_v59  ;;  %v2138_v8 = vsub.f32 %v3990_v29, %v4112_v25  ;;  %v2139_v9 = vsub.f32 %v3992_v20, %v4112_v25 }
 0x519   : > { %v2265_v18 = vadd.f32 %v2877_v16, %v2875_v17 }
 0x51a   : > { %2886 = vpow2.f32 %v2212_v63  ;;  %v2216_v6 = vmul.f32 1.442695, %v2138_v8  ;;  %v2218_v36 = vmul.f32 1.442695, %v2139_v9 }
 0x51b   : > { %2888 = vpow2.f32 %v2214_v22  ;;  %2266 = vadd.xlane.f32.xlu0 %v2265_v18 }
 0x51c   : > { %v2879_v58 = vpop.eup %2878  ;;  %2890 = vpow2.f32 %v2216_v6 }
 0x51d   : > { %v2881_v7 = vpop.eup %2880  ;;  %2892 = vpow2.f32 %v2218_v36 }
 0x51e   : > { %v2883_v5 = vpop.eup %2882  ;;  %v2268_v19 = vadd.f32 %v2881_v7, %v2879_v58 }
 0x51f   : > { %v2885_v34 = vpop.eup %2884 }
 0x520   : > { %2269 = vadd.xlane.f32.xlu1 %v2268_v19  ;;  %v2271_v59 = vadd.f32 %v2885_v34, %v2883_v5 }
 0x522   : > { %2272 = vadd.xlane.f32.xlu0 %v2271_v59 }
 0x524   : > { %v2887_v29 = vpop.eup %2886 }
 0x525   : > { %v2889_v20 = vpop.eup %2888 }
 0x526   : > { %v2891_v17 = vpop.eup %2890  ;;  %v2274_v16 = vadd.f32 %v2889_v20, %v2887_v29 }
 0x527   : > { %v2893_v63 = vpop.eup %2892 }
 0x528   : > { %2275 = vadd.xlane.f32.xlu1 %v2274_v16  ;;  %v2277_v22 = vadd.f32 %v2893_v63, %v2891_v17 }
 0x52a   : > { %2278 = vadd.xlane.f32.xlu0 %v2277_v22 }
 0x56d   : > { %v2222_v8 = vpop.xlane.xlu1 %2221 }
 0x56e   : > { %2894 = vlog2.f32 %v2222_v8 }
 0x570   : > { %v2225_v9 = vpop.xlane.xlu0 %2224 }
 0x571   : > { %2896 = vlog2.f32 %v2225_v9 }
 0x575   : > { %v2228_v58 = vpop.xlane.xlu1 %2227 }
 0x576   : > { %2898 = vlog2.f32 %v2228_v58 }
 0x578   : > { %v2895_v18 = vpop.eup %2894 }
 0x579   : > { %v2281_v6 = vmul.f32 0.6931472, %v2895_v18  ;;  %v2231_v36 = vpop.xlane.xlu0 %2230 }
 0x57a   : > { %2900 = vlog2.f32 %v2231_v36 }
 0x57b   : > { %v2897_v7 = vpop.eup %2896  ;;  %v2320_v29 = vadd.f32 %v2281_v6, %v3998_v2 }
 0x57c   : > { %v2283_v20 = vmul.f32 0.6931472, %v2897_v7 }
 0x57d   : > { %v2340_v5 = vsub.f32 %v3840_v49, %v2320_v29  ;;  %v2341_v19 = vsub.f32 %v3843_v53, %v2320_v29  ;;  %v2234_v34 = vpop.xlane.xlu1 %2233 }
 0x57e   : > { %v2321_v59 = vadd.f32 %v2283_v20, %v4004_v26  ;;  %2902 = vlog2.f32 %v2234_v34 }
 0x57f   : > { %2380 = vst [vmem:[%s4125_s21] sm:$0xff] %v2340_v5  ;;  %2381 = vst [vmem:[%s4125_s21 + $0x8] sm:$0xff] %v2341_v19 }
 0x580   : > { %v2899_v17 = vpop.eup %2898  ;;  %v2342_v2 = vsub.f32 %v3846_v56, %v2321_v59  ;;  %v2343_v49 = vsub.f32 %v3848_v57, %v2321_v59  ;;  %v2237_v53 = vpop.xlane.xlu0 %2236 }
 0x581   : > { %v2285_v16 = vmul.f32 0.6931472, %v2899_v17  ;;  %2904 = vlog2.f32 %v2237_v53 }
 0x582   : > { %2382 = vst [vmem:[%s4125_s21 + $0x10] sm:$0xff] %v2342_v2  ;;  %2383 = vst [vmem:[%s4125_s21 + $0x18] sm:$0xff] %v2343_v49 }
 0x583   : > { %v2322_v26 = vadd.f32 %v2285_v16, %v4010_v54 }
 0x584   : > { %v2901_v63 = vpop.eup %2900 }
 0x585   : > { %v2344_v22 = vsub.f32 %v3856_v4, %v2322_v26  ;;  %v2345_v8 = vsub.f32 %v3859_v44, %v2322_v26  ;;  %v2287_v9 = vmul.f32 0.6931472, %v2901_v63  ;;  %v2240_v58 = vpop.xlane.xlu1 %2239  ;;  %v4313_v63 = vld [vmem:[#allocation5_spill] sm:$0xff] }
 0x586   : > { %2906 = vlog2.f32 %v2240_v58  ;;  %v4314_v58 = vld [vmem:[#allocation6_spill] sm:$0xff] }
 0x587   : > { %2384 = vst [vmem:[%s4125_s21 + $0x20] sm:$0xff] %v2344_v22  ;;  %2385 = vst [vmem:[%s4125_s21 + $0x28] sm:$0xff] %v2345_v8  ;;  %v2323_v56 = vadd.f32 %v2287_v9, %v4016_v40 }
 0x588   : > { %v2903_v57 = vpop.eup %2902  ;;  %v2243_v18 = vpop.xlane.xlu0 %2242 }
 0x589   : > { %v2346_v54 = vsub.f32 %v3862_v14, %v2323_v56  ;;  %v2347_v6 = vsub.f32 %v3864_v15, %v2323_v56  ;;  %v2289_v36 = vmul.f32 0.6931472, %v2903_v57  ;;  %2908 = vlog2.f32 %v2243_v18 }
 0x58b   : > { %v2905_v4 = vpop.eup %2904  ;;  %2386 = vst [vmem:[%s4125_s21 + $0x30] sm:$0xff] %v2346_v54  ;;  %2387 = vst [vmem:[%s4125_s21 + $0x38] sm:$0xff] %v2347_v6  ;;  %v2324_v44 = vadd.f32 %v2289_v36, %v4022_v62  ;;  %v4315_v6 = vld [vmem:[#allocation7_spill] sm:$0xff] }
 0x58c   : > { %v2291_v7 = vmul.f32 0.6931472, %v2905_v4 }
 0x58d   : > { %v2348_v40 = vsub.f32 %v3872_v21, %v2324_v44  ;;  %v2349_v29 = vsub.f32 %v3875_v24, %v2324_v44  ;;  %v2246_v20 = vpop.xlane.xlu1 %2245 }
 0x58e   : > { %v2325_v5 = vadd.f32 %v2291_v7, %v4028_v51  ;;  %2910 = vlog2.f32 %v2246_v20 }
 0x58f   : > { %2388 = vst [vmem:[%s4125_s21 + $0x40] sm:$0xff] %v2348_v40  ;;  %2389 = vst [vmem:[%s4125_s21 + $0x48] sm:$0xff] %v2349_v29  ;;  %v4316_v40 = vld [vmem:[#allocation8_spill] sm:$0xff] }
 0x590   : > { %v2907_v14 = vpop.eup %2906  ;;  %v2350_v15 = vsub.f32 %v3878_v28, %v2325_v5  ;;  %v2351_v19 = vsub.f32 %v3880_v3, %v2325_v5  ;;  %v2249_v62 = vpop.xlane.xlu0 %2248 }
 0x591   : > { %v2293_v34 = vmul.f32 0.6931472, %v2907_v14  ;;  %2912 = vlog2.f32 %v2249_v62 }
 0x592   : > { %2390 = vst [vmem:[%s4125_s21 + $0x50] sm:$0xff] %v2350_v15  ;;  %2391 = vst [vmem:[%s4125_s21 + $0x58] sm:$0xff] %v2351_v19  ;;  %v4317_v15 = vld [vmem:[#allocation9_spill] sm:$0xff] }
 0x593   : > { %v2909_v21 = vpop.eup %2908  ;;  %v2326_v24 = vadd.f32 %v2293_v34, %v4034_v0 }
 0x594   : > { %v2295_v51 = vmul.f32 0.6931472, %v2909_v21 }
 0x595   : > { %v2352_v59 = vsub.f32 %v3888_v37, %v2326_v24  ;;  %v2353_v17 = vsub.f32 %v3891_v31, %v2326_v24  ;;  %v2252_v2 = vpop.xlane.xlu1 %2251 }
 0x596   : > { %v2327_v28 = vadd.f32 %v2295_v51, %v4040_v46  ;;  %2914 = vlog2.f32 %v2252_v2  ;;  %v4318_v51 = vld [vmem:[#allocation10_spill] sm:$0xff] }
 0x597   : > { %2392 = vst [vmem:[%s4125_s21 + $0x60] sm:$0xff] %v2352_v59  ;;  %2393 = vst [vmem:[%s4125_s21 + $0x68] sm:$0xff] %v2353_v17 }
 0x598   : > { %v2911_v3 = vpop.eup %2910  ;;  %v2354_v49 = vsub.f32 %v3894_v32, %v2327_v28  ;;  %v2355_v53 = vsub.f32 %v3896_v45, %v2327_v28  ;;  %v2255_v0 = vpop.xlane.xlu0 %2254  ;;  %v4319_v28 = vld [vmem:[#allocation11_spill] sm:$0xff] }
 0x599   : > { %v2297_v16 = vmul.f32 0.6931472, %v2911_v3  ;;  %2916 = vlog2.f32 %v2255_v0 }
 0x59a   : > { %2394 = vst [vmem:[%s4125_s21 + $0x70] sm:$0xff] %v2354_v49  ;;  %2395 = vst [vmem:[%s4125_s21 + $0x78] sm:$0xff] %v2355_v53 }
 0x59b   : > { %v2913_v37 = vpop.eup %2912  ;;  %v2328_v31 = vadd.f32 %v2297_v16, %v4046_v42 }
 0x59c   : > { %v2299_v46 = vmul.f32 0.6931472, %v2913_v37 }
 0x59d   : > { %v2356_v26 = vsub.f32 %v3904_v50, %v2328_v31  ;;  %v2357_v22 = vsub.f32 %v4313_v63, %v2328_v31  ;;  %v2258_v8 = vpop.xlane.xlu1 %2257  ;;  %v4321_v63 = vld [vmem:[#allocation13_spill] sm:$0xff] }
 0x59e   : > { %v2329_v32 = vadd.f32 %v2299_v46, %v4052_v38  ;;  %2918 = vlog2.f32 %v2258_v8 }
 0x59f   : > { %2396 = vst [vmem:[%s4125_s21 + $0x80] sm:$0xff] %v2356_v26  ;;  %2397 = vst [vmem:[%s4125_s21 + $0x88] sm:$0xff] %v2357_v22 }
 0x5a0   : > { %v2915_v45 = vpop.eup %2914  ;;  %v2358_v9 = vsub.f32 %v3910_v23, %v2329_v32  ;;  %v2359_v56 = vsub.f32 %v4314_v58, %v2329_v32  ;;  %v2261_v42 = vpop.xlane.xlu0 %2260  ;;  %v4322_v32 = vld [vmem:[#allocation14_spill] sm:$0xff] }
 0x5a1   : > { %v2301_v57 = vmul.f32 0.6931472, %v2915_v45  ;;  %2920 = vlog2.f32 %v2261_v42 }
 0x5a2   : > { %2398 = vst [vmem:[%s4125_s21 + $0x90] sm:$0xff] %v2358_v9  ;;  %2399 = vst [vmem:[%s4125_s21 + $0x98] sm:$0xff] %v2359_v56  ;;  %v4323_v56 = vld [vmem:[#allocation15_spill] sm:$0xff] }
 0x5a3   : > { %v2917_v50 = vpop.eup %2916  ;;  %v2330_v18 = vadd.f32 %v2301_v57, %v4058_v60 }
 0x5a4   : > { %v2303_v38 = vmul.f32 0.6931472, %v2917_v50 }
 0x5a5   : > { %v2360_v54 = vsub.f32 %v3920_v30, %v2330_v18  ;;  %v2361_v36 = vsub.f32 %v4315_v6, %v2330_v18  ;;  %v2264_v4 = vpop.xlane.xlu1 %2263  ;;  %v4325_v18 = vld [vmem:[#allocation17_spill] sm:$0xff] }
 0x5a6   : > { %v2331_v23 = vadd.f32 %v2303_v38, %v4064_v35  ;;  %2922 = vlog2.f32 %v2264_v4 }
 0x5a7   : > { %2400 = vst [vmem:[%s4125_s21 + $0xa0] sm:$0xff] %v2360_v54  ;;  %2401 = vst [vmem:[%s4125_s21 + $0xa8] sm:$0xff] %v2361_v36 }
 0x5a8   : > { %v2919_v44 = vpop.eup %2918  ;;  %v2362_v7 = vsub.f32 %v3926_v39, %v2331_v23  ;;  %v2363_v29 = vsub.f32 %v4316_v40, %v2331_v23  ;;  %v2267_v60 = vpop.xlane.xlu0 %2266 }
 0x5a9   : > { %v2305_v20 = vmul.f32 0.6931472, %v2919_v44  ;;  %2924 = vlog2.f32 %v2267_v60 }
 0x5aa   : > { %2402 = vst [vmem:[%s4125_s21 + $0xb0] sm:$0xff] %v2362_v7  ;;  %2403 = vst [vmem:[%s4125_s21 + $0xb8] sm:$0xff] %v2363_v29 }
 0x5ab   : > { %v2921_v30 = vpop.eup %2920  ;;  %v2332_v5 = vadd.f32 %v2305_v20, %v4070_v47 }
 0x5ac   : > { %v2307_v35 = vmul.f32 0.6931472, %v2921_v30 }
 0x5ad   : > { %v2364_v14 = vsub.f32 %v3936_v52, %v2332_v5  ;;  %v2365_v19 = vsub.f32 %v4317_v15, %v2332_v5  ;;  %v2270_v62 = vpop.xlane.xlu1 %2269 }
 0x5ae   : > { %v2333_v39 = vadd.f32 %v2307_v35, %v4076_v55  ;;  %2926 = vlog2.f32 %v2270_v62 }
 0x5af   : > { %2404 = vst [vmem:[%s4125_s21 + $0xc0] sm:$0xff] %v2364_v14  ;;  %2405 = vst [vmem:[%s4125_s21 + $0xc8] sm:$0xff] %v2365_v19  ;;  %v2273_v34 = vpop.xlane.xlu0 %2272 }
 0x5b0   : > { %v2923_v21 = vpop.eup %2922  ;;  %v2366_v24 = vsub.f32 %v3942_v11, %v2333_v39  ;;  %v2367_v47 = vsub.f32 %v4318_v51, %v2333_v39  ;;  %2928 = vlog2.f32 %v2273_v34 }
 0x5b1   : > { %v2309_v59 = vmul.f32 0.6931472, %v2923_v21 }
 0x5b2   : > { %2406 = vst [vmem:[%s4125_s21 + $0xd0] sm:$0xff] %v2366_v24  ;;  %2407 = vst [vmem:[%s4125_s21 + $0xd8] sm:$0xff] %v2367_v47 }
 0x5b3   : > { %v2925_v52 = vpop.eup %2924  ;;  %v2334_v17 = vadd.f32 %v2309_v59, %v4082_v61  ;;  %v4320_v61 = vld [vmem:[#allocation12_spill] sm:$0xff] }
 0x5b4   : > { %v2311_v55 = vmul.f32 0.6931472, %v2925_v52 }
 0x5b5   : > { %v2368_v2 = vsub.f32 %v3952_v1, %v2334_v17  ;;  %v2369_v3 = vsub.f32 %v4319_v28, %v2334_v17  ;;  %v2276_v49 = vpop.xlane.xlu1 %2275 }
 0x5b6   : > { %v2335_v53 = vadd.f32 %v2311_v55, %v4088_v10  ;;  %2930 = vlog2.f32 %v2276_v49 }
 0x5b7   : > { %2408 = vst [vmem:[%s4125_s21 + $0xe0] sm:$0xff] %v2368_v2  ;;  %2409 = vst [vmem:[%s4125_s21 + $0xe8] sm:$0xff] %v2369_v3  ;;  %v2279_v11 = vpop.xlane.xlu0 %2278 }
 0x5b8   : > { %v2927_v0 = vpop.eup %2926  ;;  %v2370_v16 = vsub.f32 %v3958_v13, %v2335_v53  ;;  %v2371_v37 = vsub.f32 %v4320_v61, %v2335_v53  ;;  %2932 = vlog2.f32 %v2279_v11 }
 0x5b9   : > { %v2313_v1 = vmul.f32 0.6931472, %v2927_v0 }
 0x5ba   : > { %v2929_v31 = vpop.eup %2928  ;;  %2410 = vst [vmem:[%s4125_s21 + $0xf0] sm:$0xff] %v2370_v16  ;;  %2411 = vst [vmem:[%s4125_s21 + $0xf8] sm:$0xff] %v2371_v37 }
 0x5bb   : > { %v2336_v10 = vadd.f32 %v2313_v1, %v4094_v12  ;;  %v2315_v46 = vmul.f32 0.6931472, %v2929_v31 }
 0x5bd   : > { %v2372_v26 = vsub.f32 %v3968_v27, %v2336_v10  ;;  %v2373_v22 = vsub.f32 %v4321_v63, %v2336_v10  ;;  %v2337_v13 = vadd.f32 %v2315_v46, %v4100_v43 }
 0x5bf   : > { %2412 = vst [vmem:[%s4125_s21 + $0x100] sm:$0xff] %v2372_v26  ;;  %2413 = vst [vmem:[%s4125_s21 + $0x108] sm:$0xff] %v2373_v22  ;;  %v2374_v8 = vsub.f32 %v3974_v33, %v2337_v13  ;;  %v2375_v45 = vsub.f32 %v4322_v32, %v2337_v13 }
 0x5c0   : > { %v2931_v9 = vpop.eup %2930 }
 0x5c1   : > { %2414 = vst [vmem:[%s4125_s21 + $0x110] sm:$0xff] %v2374_v8  ;;  %2415 = vst [vmem:[%s4125_s21 + $0x118] sm:$0xff] %v2375_v45  ;;  %v2317_v12 = vmul.f32 0.6931472, %v2931_v9 }
 0x5c2   : > { %v2933_v58 = vpop.eup %2932 }
 0x5c3   : > { %v2338_v27 = vadd.f32 %v2317_v12, %v4106_v41  ;;  %v2319_v43 = vmul.f32 0.6931472, %v2933_v58  ;;  %v4324_v41 = vld [vmem:[#allocation16_spill] sm:$0xff] }
 0x5c5   : > { %v2376_v33 = vsub.f32 %v3984_v48, %v2338_v27  ;;  %v2377_v42 = vsub.f32 %v4323_v56, %v2338_v27  ;;  %v2339_v57 = vadd.f32 %v2319_v43, %v4112_v25 }
 0x5c7   : > { %2416 = vst [vmem:[%s4125_s21 + $0x120] sm:$0xff] %v2376_v33  ;;  %2417 = vst [vmem:[%s4125_s21 + $0x128] sm:$0xff] %v2377_v42  ;;  %v2378_v50 = vsub.f32 %v4324_v41, %v2339_v57  ;;  %v2379_v48 = vsub.f32 %v4325_v18, %v2339_v57 }
 0x5c9   : > { %2418 = vst [vmem:[%s4125_s21 + $0x130] sm:$0xff] %v2378_v50  ;;  %2419 = vst [vmem:[%s4125_s21 + $0x138] sm:$0xff] %v2379_v48 }
 0x5ca   : > { %2947 = shalt.err (!%p2944_p3)
}
 0x5cb   : > { %s2948_s28 = scalar_lea.hbm %s4222_s26, 5120  ;;  %s2952_s22 = scalar_lea.hbm %s4284_s9, 10240 }
 0x5cc   : > { %p2949_p4 = scmp.ne.s32.totalorder %s4222_s26, %s2948_s28  ;;  %p2953_p9 = scmp.lt.u32.totalorder %s4222_s26, %s4284_s9 }
 0x5cd   : > { %p2954_p10 = scmp.lt.u32.totalorder %s2952_s22, %s2948_s28  ;;  %p2956_p12 = scmp.lt.u32.totalorder %s2948_s28, %s4222_s26 }
 0x5ce   : > { %p2950_p7 = pnand %p2949_p4, %p3090_p5 }
 0x5cf   : > { %p2955_p11 = por %p2954_p10, %p2953_p9 }
 0x5d0   : > { %p2951_p8 = pneg %p2950_p7 }
 0x5d1   : > { %p2957_p13 = por %p2956_p12, %p2955_p11 }
 0x5d3   : > { %p2958_p0 = pnand %p2957_p13, %p2951_p8 }
 0x5d5   : > { %2961 = shalt.err (!%p2958_p0)
}
 0x5d6   : > { %s3000_s27 = smov 256   ;;  %s3001_s29 = smov 16  }
 0x5d7   : > { %2628 = dma.vmem_to_hbm [thread:$0]  (%p3090_p5), %s4224_s24, 5120, %s4222_s26, %s4234_s13, %s3000_s27, %s3000_s27, %s3001_s29  }
 0x5d8 PF: > { %p2634_p1 = scmp.ge.s32.totalorder %s2996_s12, 2  ;;  %s2450_s14 = sand.u32 1, %s2984_s30  }
 0x5d9   : > { %s2451_s23 = scalar_lea.sflag [#allocation3], %s2450_s14 }
 0x5da   : > { %p2631_p2 = pnand %p2634_p1, %p3094_p6 }
 0x5dc   : > { %2979 = dma.done.wait (!%p2631_p2), %s2451_s23, 5120  }
 0x5dd   : > { %2981 = vsyncadd (!%p2631_p2), %s2451_s23, 4294962176  ;;  %p19_p3 = scmp.ge.s32.totalorder %s3077_s15, 4   ;;  %s4326_s30 = smov %s2988_s10 }
 0x5de   : > { %s4327_s10 = smov %s2992_s11  ;;  %s4328_s11 = smov %s3088_s18 }
 0x5df   : > { %s4329_s12 = smov %s3077_s15  ;;  %21 = sbr.rel (!%p19_p3) target bundleno = 3 (0x3), region = 91 }
 0x5e6   :  { %2456 = vsyncpa [#allocation3], 1 }
 0x5e7   :  { %2458 = vsyncpa [#allocation3 + $0x1], 1 }

</bundles_post_ra>
